<compile_context>
chip_gen: v7x
topology: tpu7x:2x2x1
jax: 0.10.0
libtpu: 0.0.40
codegen_flags: <defaults>
</compile_context>

<pallas_src>
import math

import jax
import jax.numpy as jnp
from jax.experimental import pallas as pl
from jax.experimental.pallas import tpu as pltpu

NEG_SLOPE = 0.01   # nn.LeakyReLU default
EPS = 1e-5         # BatchNorm1d / LayerNorm default eps

# vec-table row layout (width 2F; F-wide rows live in columns [0:F]):
_R_ECB1, _R_ECB2, _R_EVB1, _R_EVB2, _R_FFB = 0, 1, 2, 3, 4
_R_LN = 5                      # 8 rows: g11, b11, g12, b12, g21, b21, g22, b22
_R_ATT = 13                    # 8 rows per attention: q.b1, q.b2, q.g, q.beta,
_ATT_ROWS = 8                  #                       kv.b1, kv.b2, kv.g, kv.beta
_N_VEC_ROWS = _R_ATT + 2 * _ATT_ROWS    # 29


def _leaky(x):
    return jnp.where(x > 0, x, NEG_SLOPE * x)


# ----------------------------------------------------------------------------
# Single fused Pallas kernel: the whole att_block forward stays in VMEM/vregs.
# ----------------------------------------------------------------------------

def att_block_kernel(a_ref, at_ref, c_ref, v_ref, wemb_ref, watt_ref, vec_ref,
                     out_ref):
    F = wemb_ref.shape[1]
    F2 = 2 * F
    Nc = c_ref.shape[0]

    def vrow(r, width=F):
        # Static slice of the packed vector table -> (1, width) row.
        return vec_ref[r:r + 1, 0:width]

    def linear(x, w, b):
        return jnp.dot(x, w, preferred_element_type=jnp.float32) + b

    def bn_cols(h):
        # BatchNorm1d with batch statistics (biased variance); affine applied by
        # the caller.  Column-wise, so it is identical whether applied per
        # branch or on the lane-fused (N, 2F) activation.
        mu = jnp.mean(h, axis=0, keepdims=True)
        var = jnp.mean((h - mu) ** 2, axis=0, keepdims=True)
        return (h - mu) * jax.lax.rsqrt(var + EPS)

    def layer_norm(s, g, b):
        mu = jnp.mean(s, axis=1, keepdims=True)
        var = jnp.mean((s - mu) ** 2, axis=1, keepdims=True)
        return (s - mu) * jax.lax.rsqrt(var + EPS) * g + b

    def emb(x, wi, b1_row, b2_row):
        # base_emb = Sequential(Linear, Linear, LeakyReLU); the head repeat is
        # already folded into the (tiled) second weight, so output width is F.
        h = linear(x, wemb_ref[wi], vrow(b1_row))
        return _leaky(linear(h, wemb_ref[wi + 1], vrow(b2_row)))

    def attention(mask, q_in, k_in, j):
        w = watt_ref[j]                          # (4F, 2F) packed weight slab
        base = _R_ATT + _ATT_ROWS * j
        # q branch: Linear/LeakyReLU x2, then BatchNorm (batch stats) + affine.
        qh = _leaky(linear(q_in, w[0:F, 0:F], vrow(base + 0)))
        qe = bn_cols(_leaky(linear(qh, w[0:F, F:F2], vrow(base + 1))))
        qe = qe * vrow(base + 2) + vrow(base + 3)
        # Fused k|v branches (shared input): one (F, 2F) first matmul, one
        # block-diagonal (2F, 2F) second matmul, column-wise BatchNorm of both.
        kv = _leaky(linear(k_in, w[F:F2, :], vrow(base + 4, F2)))
        kv = _leaky(linear(kv, w[F2:2 * F2, :], vrow(base + 5, F2)))
        kv = bn_cols(kv) * vrow(base + 6, F2) + vrow(base + 7, F2)
        ke = kv[:, 0:F]
        ve = kv[:, F:F2]
        # q @ k.T via dot_general contracting the last axes (no transpose).
        prod = jax.lax.dot_general(qe, ke, (((1,), (1,)), ((), ())),
                                   preferred_element_type=jnp.float32)
        m = mask * (prod * (1.0 / math.sqrt(F)))
        m = m - jnp.max(m, axis=1, keepdims=True)       # stabilized softmax(dim=1)
        e = jnp.exp(m)
        p = e / jnp.sum(e, axis=1, keepdims=True)        # exact reciprocal
        return jnp.dot(p, ve, preferred_element_type=jnp.float32)

    c1t = emb(c_ref[...], 0, _R_ECB1, _R_ECB2)           # (Nc, F) == c1.repeat(1, H)
    v1t = emb(v_ref[...], 2, _R_EVB1, _R_EVB2)           # (Nv, F)
    ff_w = wemb_ref[4]
    ff_b = vrow(_R_FFB)

    # c2 = norm11(att1(A, c1t, v1t) + c1t); c2 = norm12(c2 + att_for1(c2))
    c2 = layer_norm(attention(a_ref[...], c1t, v1t, 0) + c1t,
                    vrow(_R_LN + 0), vrow(_R_LN + 1))
    c2 = layer_norm(c2 + _leaky(linear(c2, ff_w, ff_b)),
                    vrow(_R_LN + 2), vrow(_R_LN + 3))

    # v2 = norm21(att2(AT, v1t, c2) + v1t); v2 = norm22(v2 + att_for1(v2))
    v2 = layer_norm(attention(at_ref[...], v1t, c2, 1) + v1t,
                    vrow(_R_LN + 4), vrow(_R_LN + 5))
    v2 = layer_norm(v2 + _leaky(linear(v2, ff_w, ff_b)),
                    vrow(_R_LN + 6), vrow(_R_LN + 7))

    # Single stacked output (one writeback DMA); the wrapper splits it.
    out_ref[0:Nc, :] = c2
    out_ref[Nc:, :] = v2


# ----------------------------------------------------------------------------
# Forward wrapper: one pallas_call for the whole block.
# ----------------------------------------------------------------------------

def att_block_forward(packed, A, AT, v, c):
    F = packed["wemb"].shape[1]
    Nc, Nv = c.shape[0], v.shape[0]
    # Zero-pad the raw feature dims to F (zero weight rows make this a no-op).
    c_p = jnp.pad(c, ((0, 0), (0, F - c.shape[1])))
    v_p = jnp.pad(v, ((0, 0), (0, F - v.shape[1])))
    # TODO(synk): at production N, add a row grid with
    # dimension_semantics=("parallel",) for v7x's two TensorCores and stream
    # A/AT from HBM (memory_space=pl.ANY); BatchNorm (axis=0) and softmax (full
    # key axis) then need a two-pass statistics gather, so they stay un-tiled
    # at these toy shapes.
    out = pl.pallas_call(
        att_block_kernel,
        out_shape=jax.ShapeDtypeStruct((Nc + Nv, F), jnp.float32),
        in_specs=[pl.BlockSpec(memory_space=pltpu.MemorySpace.VMEM)] * 7,
        out_specs=pl.BlockSpec(memory_space=pltpu.MemorySpace.VMEM),
        compiler_params=pltpu.CompilerParams(vmem_limit_bytes=32 * 1024 * 1024),
    )(A, AT, c_p, v_p, packed["wemb"], packed["watt"], packed["vec"])
    return out[:Nc], out[Nc:]


# ----------------------------------------------------------------------------
# Parameter construction (PyTorch-like, unpacked) and packing for the kernel.
# ----------------------------------------------------------------------------

def _linear_init(key, in_dim, out_dim):
    k1, k2 = jax.random.split(key)
    bound = 1.0 / math.sqrt(in_dim)
    w = jax.random.uniform(k1, (in_dim, out_dim), jnp.float32, -bound, bound)
    b = jax.random.uniform(k2, (1, out_dim), jnp.float32, -bound, bound)
    return w, b


def _mlp2_init(key, in_dim, out_dim):
    k1, k2 = jax.random.split(key)
    w1, b1 = _linear_init(k1, in_dim, out_dim)
    w2, b2 = _linear_init(k2, out_dim, out_dim)
    return {"w1": w1, "b1": b1, "w2": w2, "b2": b2,
            "gamma": jnp.ones((1, out_dim), jnp.float32),   # BatchNorm1d defaults
            "beta": jnp.zeros((1, out_dim), jnp.float32)}


def init_att_block(key, v_size, c_size, first_emb_size, multi_head=4,
                   is_first=True):
    F = first_emb_size * multi_head
    ks = jax.random.split(key, 5)
    emb_v_in = v_size if is_first else v_size * multi_head
    emb_c_in = c_size if is_first else c_size * multi_head

    def att_init(k):
        kq, kk, kv = jax.random.split(k, 3)
        return {"q": _mlp2_init(kq, F, F), "k": _mlp2_init(kk, F, F),
                "v": _mlp2_init(kv, F, F)}

    ff_w, ff_b = _linear_init(ks[4], F, F)       # att_for1 (att_for2 is unused)
    ones, zeros = jnp.ones((1, F), jnp.float32), jnp.zeros((1, F), jnp.float32)
    ln = {"g11": ones, "b11": zeros, "g12": ones, "b12": zeros,
          "g21": ones, "b21": zeros, "g22": ones, "b22": zeros}
    return {"embc": _mlp2_init(ks[0], emb_c_in, first_emb_size),
            "embv": _mlp2_init(ks[1], emb_v_in, first_emb_size),
            "att1": att_init(ks[2]), "att2": att_init(ks[3]),
            "ff": {"w": ff_w, "b": ff_b}, "ln": ln}


def pack_att_block(params, first_emb_size, multi_head):
    """Pack the unpacked (PyTorch-like) params into 3 wide arrays for the kernel."""
    F = first_emb_size * multi_head
    F2 = 2 * F
    assert F >= params["embc"]["w1"].shape[0] and F >= params["embv"]["w1"].shape[0]

    def pad_w(w):            # pad an (r, c) weight into an (F, F) block (zeros)
        return jnp.pad(w, ((0, F - w.shape[0]), (0, F - w.shape[1])))

    def pad_row(x):          # pad a (1, d) vector row to (1, 2F)
        return jnp.pad(x, ((0, 0), (0, F2 - x.shape[1])))

    embc, embv, ff = params["embc"], params["embv"], params["ff"]
    # Head repeat folded into the second embedding weights/biases (tiled to F).
    wemb = jnp.stack([pad_w(embc["w1"]),
                      pad_w(jnp.tile(embc["w2"], (1, multi_head))),
                      pad_w(embv["w1"]),
                      pad_w(jnp.tile(embv["w2"], (1, multi_head))),
                      ff["w"]], axis=0)                                # (5, F, F)

    def pack_attention(att):
        q, k, v = att["q"], att["k"], att["v"]
        W = jnp.zeros((4 * F, F2), jnp.float32)
        W = W.at[0:F, 0:F].set(q["w1"])
        W = W.at[0:F, F:F2].set(q["w2"])
        W = W.at[F:F2, :].set(jnp.concatenate([k["w1"], v["w1"]], axis=1))
        W = W.at[F2:3 * F, 0:F].set(k["w2"])       # block-diagonal second layer
        W = W.at[3 * F:4 * F, F:F2].set(v["w2"])
        rows = [pad_row(q["b1"]), pad_row(q["b2"]),
                pad_row(q["gamma"]), pad_row(q["beta"]),
                jnp.concatenate([k["b1"], v["b1"]], axis=1),
                jnp.concatenate([k["b2"], v["b2"]], axis=1),
                jnp.concatenate([k["gamma"], v["gamma"]], axis=1),
                jnp.concatenate([k["beta"], v["beta"]], axis=1)]
        return W, jnp.concatenate(rows, axis=0)                 # (4F, 2F), (8, 2F)

    W1, vec1 = pack_attention(params["att1"])
    W2, vec2 = pack_attention(params["att2"])

    ln = params["ln"]
    vec = jnp.concatenate(
        [pad_row(embc["b1"]), pad_row(jnp.tile(embc["b2"], (1, multi_head))),
         pad_row(embv["b1"]), pad_row(jnp.tile(embv["b2"], (1, multi_head))),
         pad_row(ff["b"])]
        + [pad_row(ln[n]) for n in
           ("g11", "b11", "g12", "b12", "g21", "b21", "g22", "b22")]
        + [vec1, vec2], axis=0)                                        # (29, 2F)
    assert vec.shape[0] == _N_VEC_ROWS

    return {"wemb": wemb, "watt": jnp.stack([W1, W2], axis=0), "vec": vec}


# ----------------------------------------------------------------------------
# Pure-JAX reference (PyTorch-faithful, built from the UNPACKED params, so the
# repeat-fold / k|v fusion / block-diagonal packing are all validated).
# ----------------------------------------------------------------------------

def reference_forward(params, A, AT, v, c, multi_head):
    hp = jax.lax.Precision.HIGHEST   # keep the reference's f32 matmuls exact

    def lin(x, w, b):
        return jnp.dot(x, w, precision=hp) + b

    def base_emb(x, p):
        return _leaky(lin(lin(x, p["w1"], p["b1"]), p["w2"], p["b2"]))

    def branch(x, p):
        h = _leaky(lin(x, p["w1"], p["b1"]))
        h = _leaky(lin(h, p["w2"], p["b2"]))
        mu = h.mean(0, keepdims=True)
        var = ((h - mu) ** 2).mean(0, keepdims=True)
        return (h - mu) / jnp.sqrt(var + EPS) * p["gamma"] + p["beta"]

    def attention(mask, q_in, k_in, p):
        qe, ke, ve = branch(q_in, p["q"]), branch(k_in, p["k"]), branch(k_in, p["v"])
        prod = jnp.dot(qe, ke.T, precision=hp) / jnp.sqrt(jnp.float32(qe.shape[1]))
        return jnp.dot(jax.nn.softmax(mask * prod, axis=1), ve, precision=hp)

    def layer_norm(s, g, b):
        mu = s.mean(1, keepdims=True)
        var = ((s - mu) ** 2).mean(1, keepdims=True)
        return (s - mu) / jnp.sqrt(var + EPS) * g + b

    c1 = base_emb(c, params["embc"])
    v1 = base_emb(v, params["embv"])
    c1t = jnp.tile(c1, (1, multi_head))
    v1t = jnp.tile(v1, (1, multi_head))
    ln, ff = params["ln"], params["ff"]
    c2 = layer_norm(attention(A, c1t, v1t, params["att1"]) + c1t, ln["g11"], ln["b11"])
    c2 = layer_norm(c2 + _leaky(lin(c2, ff["w"], ff["b"])), ln["g12"], ln["b12"])
    v2 = layer_norm(attention(AT, v1t, c2, params["att2"]) + v1t, ln["g21"], ln["b21"])
    v2 = layer_norm(v2 + _leaky(lin(v2, ff["w"], ff["b"])), ln["g22"], ln["b22"])
    return c2, v2


# ----------------------------------------------------------------------------
# main
# ----------------------------------------------------------------------------

if __name__ == "__main__":
    key = jax.random.PRNGKey(0)
    k_par, k_v, k_c, k_a = jax.random.split(key, 4)

    v_size, c_size = 6, 5
    first_emb_size, multi_head = 8, 4
    Nv, Nc = 8, 8
    F = first_emb_size * multi_head

    params = init_att_block(k_par, v_size, c_size, first_emb_size,
                            multi_head=multi_head, is_first=True)
    packed = pack_att_block(params, first_emb_size, multi_head)

    v = jax.random.normal(k_v, (Nv, v_size), jnp.float32)
    c = jax.random.normal(k_c, (Nc, c_size), jnp.float32)
    A = (jax.random.uniform(k_a, (Nc, Nv)) > 0.5).astype(jnp.float32)  # densified adjacency
    AT = A.T

    fwd = jax.jit(att_block_forward)
    c2, v2 = fwd(packed, A, AT, v, c)
    jax.block_until_ready((c2, v2))

    assert c2.shape == (Nc, F) and v2.shape == (Nv, F)
    assert bool(jnp.all(jnp.isfinite(c2))) and bool(jnp.all(jnp.isfinite(v2)))

    # 1e-2 only absorbs MXU-pass-count differences between the Pallas and XLA
    # f32 matmul paths (exact reciprocal is used in-kernel); any structural /
    # packing bug would show up as an O(1) error and fail this check.
    c2_ref, v2_ref = reference_forward(params, A, AT, v, c, multi_head)
    assert bool(jnp.allclose(c2, c2_ref, rtol=1e-2, atol=1e-2)), \
        float(jnp.max(jnp.abs(c2 - c2_ref)))
    assert bool(jnp.allclose(v2, v2_ref, rtol=1e-2, atol=1e-2)), \
        float(jnp.max(jnp.abs(v2 - v2_ref)))

    print("KERNEL_OK")
</pallas_src>

<mosaic_0001>
module attributes {stable_mosaic.version = 11 : i64} {
  func.func @att_block_kernel(%arg0: memref<8x8xf32, #tpu.memory_space<vmem>>, %arg1: memref<8x8xf32, #tpu.memory_space<vmem>>, %arg2: memref<8x32xf32, #tpu.memory_space<vmem>>, %arg3: memref<8x32xf32, #tpu.memory_space<vmem>>, %arg4: memref<5x32x32xf32, #tpu.memory_space<vmem>>, %arg5: memref<2x128x64xf32, #tpu.memory_space<vmem>>, %arg6: memref<29x64xf32, #tpu.memory_space<vmem>>, %arg7: memref<16x32xf32, #tpu.memory_space<vmem>>) attributes {dimension_semantics = [], scalar_prefetch = 0 : i64, scratch_operands = 0 : i64, tpu.core_type = #tpu.core_type<tc>} {
    %c0 = arith.constant 0 : index
    %c0_0 = arith.constant 0 : index
    %0 = vector.load %arg2[%c0, %c0_0] : memref<8x32xf32, #tpu.memory_space<vmem>>, vector<8x32xf32>
    %c0_1 = arith.constant 0 : index
    %c0_2 = arith.constant 0 : index
    %c0_3 = arith.constant 0 : index
    %1 = vector.load %arg4[%c0_1, %c0_2, %c0_3] : memref<5x32x32xf32, #tpu.memory_space<vmem>>, vector<1x32x32xf32>
    %2 = vector.shape_cast %1 : vector<1x32x32xf32> to vector<32x32xf32>
    %c0_4 = arith.constant 0 : index
    %c0_5 = arith.constant 0 : index
    %3 = vector.load %arg6[%c0_4, %c0_5] : memref<29x64xf32, #tpu.memory_space<vmem>>, vector<1x32xf32>
    %cst = arith.constant dense<0.000000e+00> : vector<8x32xf32>
    %4 = tpu.matmul %0, %2, %cst {dimension_numbers = #tpu.dot_dimension_numbers<[1], [0], [0], [1], [0, 0, 1, 1], [], []>} : vector<8x32xf32>, vector<32x32xf32>, vector<8x32xf32> -> vector<8x32xf32>
    %5 = vector.broadcast %3 : vector<1x32xf32> to vector<8x32xf32>
    %6 = arith.addf %4, %5 : vector<8x32xf32>
    %c1 = arith.constant 1 : index
    %c0_6 = arith.constant 0 : index
    %c0_7 = arith.constant 0 : index
    %7 = vector.load %arg4[%c1, %c0_6, %c0_7] : memref<5x32x32xf32, #tpu.memory_space<vmem>>, vector<1x32x32xf32>
    %8 = vector.shape_cast %7 : vector<1x32x32xf32> to vector<32x32xf32>
    %c1_8 = arith.constant 1 : index
    %c0_9 = arith.constant 0 : index
    %9 = vector.load %arg6[%c1_8, %c0_9] : memref<29x64xf32, #tpu.memory_space<vmem>>, vector<1x32xf32>
    %cst_10 = arith.constant dense<0.000000e+00> : vector<8x32xf32>
    %10 = tpu.matmul %6, %8, %cst_10 {dimension_numbers = #tpu.dot_dimension_numbers<[1], [0], [0], [1], [0, 0, 1, 1], [], []>} : vector<8x32xf32>, vector<32x32xf32>, vector<8x32xf32> -> vector<8x32xf32>
    %11 = vector.broadcast %9 : vector<1x32xf32> to vector<8x32xf32>
    %12 = arith.addf %10, %11 : vector<8x32xf32>
    %cst_11 = arith.constant 0.000000e+00 : f32
    %13 = vector.broadcast %cst_11 : f32 to vector<8x32xf32>
    %14 = arith.cmpf ogt, %12, %13 : vector<8x32xf32>
    %cst_12 = arith.constant 0.00999999977 : f32
    %15 = vector.broadcast %cst_12 : f32 to vector<8x32xf32>
    %16 = arith.mulf %15, %12 : vector<8x32xf32>
    %17 = arith.select %14, %12, %16 : vector<8x32xi1>, vector<8x32xf32>
    %c0_13 = arith.constant 0 : index
    %c0_14 = arith.constant 0 : index
    %18 = vector.load %arg3[%c0_13, %c0_14] : memref<8x32xf32, #tpu.memory_space<vmem>>, vector<8x32xf32>
    %c2 = arith.constant 2 : index
    %c0_15 = arith.constant 0 : index
    %c0_16 = arith.constant 0 : index
    %19 = vector.load %arg4[%c2, %c0_15, %c0_16] : memref<5x32x32xf32, #tpu.memory_space<vmem>>, vector<1x32x32xf32>
    %20 = vector.shape_cast %19 : vector<1x32x32xf32> to vector<32x32xf32>
    %c2_17 = arith.constant 2 : index
    %c0_18 = arith.constant 0 : index
    %21 = vector.load %arg6[%c2_17, %c0_18] : memref<29x64xf32, #tpu.memory_space<vmem>>, vector<1x32xf32>
    %cst_19 = arith.constant dense<0.000000e+00> : vector<8x32xf32>
    %22 = tpu.matmul %18, %20, %cst_19 {dimension_numbers = #tpu.dot_dimension_numbers<[1], [0], [0], [1], [0, 0, 1, 1], [], []>} : vector<8x32xf32>, vector<32x32xf32>, vector<8x32xf32> -> vector<8x32xf32>
    %23 = vector.broadcast %21 : vector<1x32xf32> to vector<8x32xf32>
    %24 = arith.addf %22, %23 : vector<8x32xf32>
    %c3 = arith.constant 3 : index
    %c0_20 = arith.constant 0 : index
    %c0_21 = arith.constant 0 : index
    %25 = vector.load %arg4[%c3, %c0_20, %c0_21] : memref<5x32x32xf32, #tpu.memory_space<vmem>>, vector<1x32x32xf32>
    %26 = vector.shape_cast %25 : vector<1x32x32xf32> to vector<32x32xf32>
    %c3_22 = arith.constant 3 : index
    %c0_23 = arith.constant 0 : index
    %27 = vector.load %arg6[%c3_22, %c0_23] : memref<29x64xf32, #tpu.memory_space<vmem>>, vector<1x32xf32>
    %cst_24 = arith.constant dense<0.000000e+00> : vector<8x32xf32>
    %28 = tpu.matmul %24, %26, %cst_24 {dimension_numbers = #tpu.dot_dimension_numbers<[1], [0], [0], [1], [0, 0, 1, 1], [], []>} : vector<8x32xf32>, vector<32x32xf32>, vector<8x32xf32> -> vector<8x32xf32>
    %29 = vector.broadcast %27 : vector<1x32xf32> to vector<8x32xf32>
    %30 = arith.addf %28, %29 : vector<8x32xf32>
    %cst_25 = arith.constant 0.000000e+00 : f32
    %31 = vector.broadcast %cst_25 : f32 to vector<8x32xf32>
    %32 = arith.cmpf ogt, %30, %31 : vector<8x32xf32>
    %cst_26 = arith.constant 0.00999999977 : f32
    %33 = vector.broadcast %cst_26 : f32 to vector<8x32xf32>
    %34 = arith.mulf %33, %30 : vector<8x32xf32>
    %35 = arith.select %32, %30, %34 : vector<8x32xi1>, vector<8x32xf32>
    %c4 = arith.constant 4 : index
    %c0_27 = arith.constant 0 : index
    %c0_28 = arith.constant 0 : index
    %36 = vector.load %arg4[%c4, %c0_27, %c0_28] : memref<5x32x32xf32, #tpu.memory_space<vmem>>, vector<1x32x32xf32>
    %37 = vector.shape_cast %36 : vector<1x32x32xf32> to vector<32x32xf32>
    %c4_29 = arith.constant 4 : index
    %c0_30 = arith.constant 0 : index
    %38 = vector.load %arg6[%c4_29, %c0_30] : memref<29x64xf32, #tpu.memory_space<vmem>>, vector<1x32xf32>
    %c0_31 = arith.constant 0 : index
    %c0_32 = arith.constant 0 : index
    %39 = vector.load %arg0[%c0_31, %c0_32] : memref<8x8xf32, #tpu.memory_space<vmem>>, vector<8x8xf32>
    %c0_33 = arith.constant 0 : index
    %c0_34 = arith.constant 0 : index
    %c0_35 = arith.constant 0 : index
    %40 = vector.load %arg5[%c0_33, %c0_34, %c0_35] : memref<2x128x64xf32, #tpu.memory_space<vmem>>, vector<1x128x64xf32>
    %41 = vector.shape_cast %40 : vector<1x128x64xf32> to vector<128x64xf32>
    %42 = vector.extract_strided_slice %41 {offsets = [0, 0], sizes = [32, 32], strides = [1, 1]} : vector<128x64xf32> to vector<32x32xf32>
    %c13 = arith.constant 13 : index
    %c0_36 = arith.constant 0 : index
    %43 = vector.load %arg6[%c13, %c0_36] : memref<29x64xf32, #tpu.memory_space<vmem>>, vector<1x32xf32>
    %cst_37 = arith.constant dense<0.000000e+00> : vector<8x32xf32>
    %44 = tpu.matmul %17, %42, %cst_37 {dimension_numbers = #tpu.dot_dimension_numbers<[1], [0], [0], [1], [0, 0, 1, 1], [], []>} : vector<8x32xf32>, vector<32x32xf32>, vector<8x32xf32> -> vector<8x32xf32>
    %45 = vector.broadcast %43 : vector<1x32xf32> to vector<8x32xf32>
    %46 = arith.addf %44, %45 : vector<8x32xf32>
    %cst_38 = arith.constant 0.000000e+00 : f32
    %47 = vector.broadcast %cst_38 : f32 to vector<8x32xf32>
    %48 = arith.cmpf ogt, %46, %47 : vector<8x32xf32>
    %cst_39 = arith.constant 0.00999999977 : f32
    %49 = vector.broadcast %cst_39 : f32 to vector<8x32xf32>
    %50 = arith.mulf %49, %46 : vector<8x32xf32>
    %51 = arith.select %48, %46, %50 : vector<8x32xi1>, vector<8x32xf32>
    %52 = vector.extract_strided_slice %41 {offsets = [0, 32], sizes = [32, 32], strides = [1, 1]} : vector<128x64xf32> to vector<32x32xf32>
    %c14 = arith.constant 14 : index
    %c0_40 = arith.constant 0 : index
    %53 = vector.load %arg6[%c14, %c0_40] : memref<29x64xf32, #tpu.memory_space<vmem>>, vector<1x32xf32>
    %cst_41 = arith.constant dense<0.000000e+00> : vector<8x32xf32>
    %54 = tpu.matmul %51, %52, %cst_41 {dimension_numbers = #tpu.dot_dimension_numbers<[1], [0], [0], [1], [0, 0, 1, 1], [], []>} : vector<8x32xf32>, vector<32x32xf32>, vector<8x32xf32> -> vector<8x32xf32>
    %55 = vector.broadcast %53 : vector<1x32xf32> to vector<8x32xf32>
    %56 = arith.addf %54, %55 : vector<8x32xf32>
    %cst_42 = arith.constant 0.000000e+00 : f32
    %57 = vector.broadcast %cst_42 : f32 to vector<8x32xf32>
    %58 = arith.cmpf ogt, %56, %57 : vector<8x32xf32>
    %cst_43 = arith.constant 0.00999999977 : f32
    %59 = vector.broadcast %cst_43 : f32 to vector<8x32xf32>
    %60 = arith.mulf %59, %56 : vector<8x32xf32>
    %61 = arith.select %58, %56, %60 : vector<8x32xi1>, vector<8x32xf32>
    %cst_44 = arith.constant dense<0.000000e+00> : vector<32xf32>
    %62 = vector.multi_reduction <add>, %61, %cst_44 [0] : vector<8x32xf32> to vector<32xf32>
    %63 = vector.shape_cast %62 : vector<32xf32> to vector<1x32xf32>
    %cst_45 = arith.constant 8.000000e+00 : f32
    %64 = vector.broadcast %cst_45 : f32 to vector<1x32xf32>
    %65 = arith.divf %63, %64 : vector<1x32xf32>
    %66 = vector.broadcast %65 : vector<1x32xf32> to vector<8x32xf32>
    %67 = arith.subf %61, %66 : vector<8x32xf32>
    %68 = arith.mulf %67, %67 : vector<8x32xf32>
    %cst_46 = arith.constant dense<0.000000e+00> : vector<32xf32>
    %69 = vector.multi_reduction <add>, %68, %cst_46 [0] : vector<8x32xf32> to vector<32xf32>
    %70 = vector.shape_cast %69 : vector<32xf32> to vector<1x32xf32>
    %cst_47 = arith.constant 8.000000e+00 : f32
    %71 = vector.broadcast %cst_47 : f32 to vector<1x32xf32>
    %72 = arith.divf %70, %71 : vector<1x32xf32>
    %73 = vector.broadcast %65 : vector<1x32xf32> to vector<8x32xf32>
    %74 = arith.subf %61, %73 : vector<8x32xf32>
    %cst_48 = arith.constant 9.99999974E-6 : f32
    %75 = vector.broadcast %cst_48 : f32 to vector<1x32xf32>
    %76 = arith.addf %72, %75 : vector<1x32xf32>
    %77 = math.rsqrt %76 : vector<1x32xf32>
    %78 = vector.broadcast %77 : vector<1x32xf32> to vector<8x32xf32>
    %79 = arith.mulf %74, %78 : vector<8x32xf32>
    %c15 = arith.constant 15 : index
    %c0_49 = arith.constant 0 : index
    %80 = vector.load %arg6[%c15, %c0_49] : memref<29x64xf32, #tpu.memory_space<vmem>>, vector<1x32xf32>
    %81 = vector.broadcast %80 : vector<1x32xf32> to vector<8x32xf32>
    %82 = arith.mulf %79, %81 : vector<8x32xf32>
    %c16 = arith.constant 16 : index
    %c0_50 = arith.constant 0 : index
    %83 = vector.load %arg6[%c16, %c0_50] : memref<29x64xf32, #tpu.memory_space<vmem>>, vector<1x32xf32>
    %84 = vector.broadcast %83 : vector<1x32xf32> to vector<8x32xf32>
    %85 = arith.addf %82, %84 : vector<8x32xf32>
    %86 = vector.extract_strided_slice %41 {offsets = [32, 0], sizes = [32, 64], strides = [1, 1]} : vector<128x64xf32> to vector<32x64xf32>
    %c17 = arith.constant 17 : index
    %c0_51 = arith.constant 0 : index
    %87 = vector.load %arg6[%c17, %c0_51] : memref<29x64xf32, #tpu.memory_space<vmem>>, vector<1x64xf32>
    %cst_52 = arith.constant dense<0.000000e+00> : vector<8x64xf32>
    %88 = tpu.matmul %35, %86, %cst_52 {dimension_numbers = #tpu.dot_dimension_numbers<[1], [0], [0], [1], [0, 0, 1, 1], [], []>} : vector<8x32xf32>, vector<32x64xf32>, vector<8x64xf32> -> vector<8x64xf32>
    %89 = vector.broadcast %87 : vector<1x64xf32> to vector<8x64xf32>
    %90 = arith.addf %88, %89 : vector<8x64xf32>
    %cst_53 = arith.constant 0.000000e+00 : f32
    %91 = vector.broadcast %cst_53 : f32 to vector<8x64xf32>
    %92 = arith.cmpf ogt, %90, %91 : vector<8x64xf32>
    %cst_54 = arith.constant 0.00999999977 : f32
    %93 = vector.broadcast %cst_54 : f32 to vector<8x64xf32>
    %94 = arith.mulf %93, %90 : vector<8x64xf32>
    %95 = arith.select %92, %90, %94 : vector<8x64xi1>, vector<8x64xf32>
    %96 = vector.extract_strided_slice %41 {offsets = [64, 0], sizes = [64, 64], strides = [1, 1]} : vector<128x64xf32> to vector<64x64xf32>
    %c18 = arith.constant 18 : index
    %c0_55 = arith.constant 0 : index
    %97 = vector.load %arg6[%c18, %c0_55] : memref<29x64xf32, #tpu.memory_space<vmem>>, vector<1x64xf32>
    %cst_56 = arith.constant dense<0.000000e+00> : vector<8x64xf32>
    %98 = tpu.matmul %95, %96, %cst_56 {dimension_numbers = #tpu.dot_dimension_numbers<[1], [0], [0], [1], [0, 0, 1, 1], [], []>} : vector<8x64xf32>, vector<64x64xf32>, vector<8x64xf32> -> vector<8x64xf32>
    %99 = vector.broadcast %97 : vector<1x64xf32> to vector<8x64xf32>
    %100 = arith.addf %98, %99 : vector<8x64xf32>
    %cst_57 = arith.constant 0.000000e+00 : f32
    %101 = vector.broadcast %cst_57 : f32 to vector<8x64xf32>
    %102 = arith.cmpf ogt, %100, %101 : vector<8x64xf32>
    %cst_58 = arith.constant 0.00999999977 : f32
    %103 = vector.broadcast %cst_58 : f32 to vector<8x64xf32>
    %104 = arith.mulf %103, %100 : vector<8x64xf32>
    %105 = arith.select %102, %100, %104 : vector<8x64xi1>, vector<8x64xf32>
    %cst_59 = arith.constant dense<0.000000e+00> : vector<64xf32>
    %106 = vector.multi_reduction <add>, %105, %cst_59 [0] : vector<8x64xf32> to vector<64xf32>
    %107 = vector.shape_cast %106 : vector<64xf32> to vector<1x64xf32>
    %cst_60 = arith.constant 8.000000e+00 : f32
    %108 = vector.broadcast %cst_60 : f32 to vector<1x64xf32>
    %109 = arith.divf %107, %108 : vector<1x64xf32>
    %110 = vector.broadcast %109 : vector<1x64xf32> to vector<8x64xf32>
    %111 = arith.subf %105, %110 : vector<8x64xf32>
    %112 = arith.mulf %111, %111 : vector<8x64xf32>
    %cst_61 = arith.constant dense<0.000000e+00> : vector<64xf32>
    %113 = vector.multi_reduction <add>, %112, %cst_61 [0] : vector<8x64xf32> to vector<64xf32>
    %114 = vector.shape_cast %113 : vector<64xf32> to vector<1x64xf32>
    %cst_62 = arith.constant 8.000000e+00 : f32
    %115 = vector.broadcast %cst_62 : f32 to vector<1x64xf32>
    %116 = arith.divf %114, %115 : vector<1x64xf32>
    %117 = vector.broadcast %109 : vector<1x64xf32> to vector<8x64xf32>
    %118 = arith.subf %105, %117 : vector<8x64xf32>
    %cst_63 = arith.constant 9.99999974E-6 : f32
    %119 = vector.broadcast %cst_63 : f32 to vector<1x64xf32>
    %120 = arith.addf %116, %119 : vector<1x64xf32>
    %121 = math.rsqrt %120 : vector<1x64xf32>
    %122 = vector.broadcast %121 : vector<1x64xf32> to vector<8x64xf32>
    %123 = arith.mulf %118, %122 : vector<8x64xf32>
    %c19 = arith.constant 19 : index
    %c0_64 = arith.constant 0 : index
    %124 = vector.load %arg6[%c19, %c0_64] : memref<29x64xf32, #tpu.memory_space<vmem>>, vector<1x64xf32>
    %125 = vector.broadcast %124 : vector<1x64xf32> to vector<8x64xf32>
    %126 = arith.mulf %123, %125 : vector<8x64xf32>
    %c20 = arith.constant 20 : index
    %c0_65 = arith.constant 0 : index
    %127 = vector.load %arg6[%c20, %c0_65] : memref<29x64xf32, #tpu.memory_space<vmem>>, vector<1x64xf32>
    %128 = vector.broadcast %127 : vector<1x64xf32> to vector<8x64xf32>
    %129 = arith.addf %126, %128 : vector<8x64xf32>
    %130 = vector.extract_strided_slice %129 {offsets = [0, 0], sizes = [8, 32], strides = [1, 1]} : vector<8x64xf32> to vector<8x32xf32>
    %131 = vector.extract_strided_slice %129 {offsets = [0, 32], sizes = [8, 32], strides = [1, 1]} : vector<8x64xf32> to vector<8x32xf32>
    %cst_66 = arith.constant dense<0.000000e+00> : vector<8x8xf32>
    %132 = tpu.matmul %85, %130, %cst_66 {dimension_numbers = #tpu.dot_dimension_numbers<[1], [1], [0], [0], [0, 0, 1, 0], [], []>} : vector<8x32xf32>, vector<8x32xf32>, vector<8x8xf32> -> vector<8x8xf32>
    %cst_67 = arith.constant 0.176776692 : f32
    %133 = vector.broadcast %cst_67 : f32 to vector<8x8xf32>
    %134 = arith.mulf %132, %133 : vector<8x8xf32>
    %135 = arith.mulf %39, %134 : vector<8x8xf32>
    %cst_68 = arith.constant dense<0xFF800000> : vector<8xf32>
    %136 = vector.multi_reduction <maximumf>, %135, %cst_68 [1] : vector<8x8xf32> to vector<8xf32>
    %137 = vector.shape_cast %136 : vector<8xf32> to vector<8x1xf32>
    %138 = vector.broadcast %137 : vector<8x1xf32> to vector<8x8xf32>
    %139 = arith.subf %135, %138 : vector<8x8xf32>
    %140 = math.exp %139 : vector<8x8xf32>
    %cst_69 = arith.constant dense<0.000000e+00> : vector<8xf32>
    %141 = vector.multi_reduction <add>, %140, %cst_69 [1] : vector<8x8xf32> to vector<8xf32>
    %142 = vector.shape_cast %141 : vector<8xf32> to vector<8x1xf32>
    %143 = vector.broadcast %142 : vector<8x1xf32> to vector<8x8xf32>
    %144 = arith.divf %140, %143 : vector<8x8xf32>
    %cst_70 = arith.constant dense<0.000000e+00> : vector<8x32xf32>
    %145 = tpu.matmul %144, %131, %cst_70 {dimension_numbers = #tpu.dot_dimension_numbers<[1], [0], [0], [1], [0, 0, 1, 1], [], []>} : vector<8x8xf32>, vector<8x32xf32>, vector<8x32xf32> -> vector<8x32xf32>
    %146 = arith.addf %145, %17 : vector<8x32xf32>
    %c5 = arith.constant 5 : index
    %c0_71 = arith.constant 0 : index
    %147 = vector.load %arg6[%c5, %c0_71] : memref<29x64xf32, #tpu.memory_space<vmem>>, vector<1x32xf32>
    %c6 = arith.constant 6 : index
    %c0_72 = arith.constant 0 : index
    %148 = vector.load %arg6[%c6, %c0_72] : memref<29x64xf32, #tpu.memory_space<vmem>>, vector<1x32xf32>
    %cst_73 = arith.constant dense<0.000000e+00> : vector<8xf32>
    %149 = vector.multi_reduction <add>, %146, %cst_73 [1] : vector<8x32xf32> to vector<8xf32>
    %150 = vector.shape_cast %149 : vector<8xf32> to vector<8x1xf32>
    %cst_74 = arith.constant 3.200000e+01 : f32
    %151 = vector.broadcast %cst_74 : f32 to vector<8x1xf32>
    %152 = arith.divf %150, %151 : vector<8x1xf32>
    %153 = vector.broadcast %152 : vector<8x1xf32> to vector<8x32xf32>
    %154 = arith.subf %146, %153 : vector<8x32xf32>
    %155 = arith.mulf %154, %154 : vector<8x32xf32>
    %cst_75 = arith.constant dense<0.000000e+00> : vector<8xf32>
    %156 = vector.multi_reduction <add>, %155, %cst_75 [1] : vector<8x32xf32> to vector<8xf32>
    %157 = vector.shape_cast %156 : vector<8xf32> to vector<8x1xf32>
    %cst_76 = arith.constant 3.200000e+01 : f32
    %158 = vector.broadcast %cst_76 : f32 to vector<8x1xf32>
    %159 = arith.divf %157, %158 : vector<8x1xf32>
    %160 = vector.broadcast %152 : vector<8x1xf32> to vector<8x32xf32>
    %161 = arith.subf %146, %160 : vector<8x32xf32>
    %cst_77 = arith.constant 9.99999974E-6 : f32
    %162 = vector.broadcast %cst_77 : f32 to vector<8x1xf32>
    %163 = arith.addf %159, %162 : vector<8x1xf32>
    %164 = math.rsqrt %163 : vector<8x1xf32>
    %165 = vector.broadcast %164 : vector<8x1xf32> to vector<8x32xf32>
    %166 = arith.mulf %161, %165 : vector<8x32xf32>
    %167 = vector.broadcast %147 : vector<1x32xf32> to vector<8x32xf32>
    %168 = arith.mulf %166, %167 : vector<8x32xf32>
    %169 = vector.broadcast %148 : vector<1x32xf32> to vector<8x32xf32>
    %170 = arith.addf %168, %169 : vector<8x32xf32>
    %cst_78 = arith.constant dense<0.000000e+00> : vector<8x32xf32>
    %171 = tpu.matmul %170, %37, %cst_78 {dimension_numbers = #tpu.dot_dimension_numbers<[1], [0], [0], [1], [0, 0, 1, 1], [], []>} : vector<8x32xf32>, vector<32x32xf32>, vector<8x32xf32> -> vector<8x32xf32>
    %172 = vector.broadcast %38 : vector<1x32xf32> to vector<8x32xf32>
    %173 = arith.addf %171, %172 : vector<8x32xf32>
    %cst_79 = arith.constant 0.000000e+00 : f32
    %174 = vector.broadcast %cst_79 : f32 to vector<8x32xf32>
    %175 = arith.cmpf ogt, %173, %174 : vector<8x32xf32>
    %cst_80 = arith.constant 0.00999999977 : f32
    %176 = vector.broadcast %cst_80 : f32 to vector<8x32xf32>
    %177 = arith.mulf %176, %173 : vector<8x32xf32>
    %178 = arith.select %175, %173, %177 : vector<8x32xi1>, vector<8x32xf32>
    %179 = arith.addf %170, %178 : vector<8x32xf32>
    %c7 = arith.constant 7 : index
    %c0_81 = arith.constant 0 : index
    %180 = vector.load %arg6[%c7, %c0_81] : memref<29x64xf32, #tpu.memory_space<vmem>>, vector<1x32xf32>
    %c8 = arith.constant 8 : index
    %c0_82 = arith.constant 0 : index
    %181 = vector.load %arg6[%c8, %c0_82] : memref<29x64xf32, #tpu.memory_space<vmem>>, vector<1x32xf32>
    %cst_83 = arith.constant dense<0.000000e+00> : vector<8xf32>
    %182 = vector.multi_reduction <add>, %179, %cst_83 [1] : vector<8x32xf32> to vector<8xf32>
    %183 = vector.shape_cast %182 : vector<8xf32> to vector<8x1xf32>
    %cst_84 = arith.constant 3.200000e+01 : f32
    %184 = vector.broadcast %cst_84 : f32 to vector<8x1xf32>
    %185 = arith.divf %183, %184 : vector<8x1xf32>
    %186 = vector.broadcast %185 : vector<8x1xf32> to vector<8x32xf32>
    %187 = arith.subf %179, %186 : vector<8x32xf32>
    %188 = arith.mulf %187, %187 : vector<8x32xf32>
    %cst_85 = arith.constant dense<0.000000e+00> : vector<8xf32>
    %189 = vector.multi_reduction <add>, %188, %cst_85 [1] : vector<8x32xf32> to vector<8xf32>
    %190 = vector.shape_cast %189 : vector<8xf32> to vector<8x1xf32>
    %cst_86 = arith.constant 3.200000e+01 : f32
    %191 = vector.broadcast %cst_86 : f32 to vector<8x1xf32>
    %192 = arith.divf %190, %191 : vector<8x1xf32>
    %193 = vector.broadcast %185 : vector<8x1xf32> to vector<8x32xf32>
    %194 = arith.subf %179, %193 : vector<8x32xf32>
    %cst_87 = arith.constant 9.99999974E-6 : f32
    %195 = vector.broadcast %cst_87 : f32 to vector<8x1xf32>
    %196 = arith.addf %192, %195 : vector<8x1xf32>
    %197 = math.rsqrt %196 : vector<8x1xf32>
    %198 = vector.broadcast %197 : vector<8x1xf32> to vector<8x32xf32>
    %199 = arith.mulf %194, %198 : vector<8x32xf32>
    %200 = vector.broadcast %180 : vector<1x32xf32> to vector<8x32xf32>
    %201 = arith.mulf %199, %200 : vector<8x32xf32>
    %202 = vector.broadcast %181 : vector<1x32xf32> to vector<8x32xf32>
    %203 = arith.addf %201, %202 : vector<8x32xf32>
    %c0_88 = arith.constant 0 : index
    %c0_89 = arith.constant 0 : index
    %204 = vector.load %arg1[%c0_88, %c0_89] : memref<8x8xf32, #tpu.memory_space<vmem>>, vector<8x8xf32>
    %c1_90 = arith.constant 1 : index
    %c0_91 = arith.constant 0 : index
    %c0_92 = arith.constant 0 : index
    %205 = vector.load %arg5[%c1_90, %c0_91, %c0_92] : memref<2x128x64xf32, #tpu.memory_space<vmem>>, vector<1x128x64xf32>
    %206 = vector.shape_cast %205 : vector<1x128x64xf32> to vector<128x64xf32>
    %207 = vector.extract_strided_slice %206 {offsets = [0, 0], sizes = [32, 32], strides = [1, 1]} : vector<128x64xf32> to vector<32x32xf32>
    %c21 = arith.constant 21 : index
    %c0_93 = arith.constant 0 : index
    %208 = vector.load %arg6[%c21, %c0_93] : memref<29x64xf32, #tpu.memory_space<vmem>>, vector<1x32xf32>
    %cst_94 = arith.constant dense<0.000000e+00> : vector<8x32xf32>
    %209 = tpu.matmul %35, %207, %cst_94 {dimension_numbers = #tpu.dot_dimension_numbers<[1], [0], [0], [1], [0, 0, 1, 1], [], []>} : vector<8x32xf32>, vector<32x32xf32>, vector<8x32xf32> -> vector<8x32xf32>
    %210 = vector.broadcast %208 : vector<1x32xf32> to vector<8x32xf32>
    %211 = arith.addf %209, %210 : vector<8x32xf32>
    %cst_95 = arith.constant 0.000000e+00 : f32
    %212 = vector.broadcast %cst_95 : f32 to vector<8x32xf32>
    %213 = arith.cmpf ogt, %211, %212 : vector<8x32xf32>
    %cst_96 = arith.constant 0.00999999977 : f32
    %214 = vector.broadcast %cst_96 : f32 to vector<8x32xf32>
    %215 = arith.mulf %214, %211 : vector<8x32xf32>
    %216 = arith.select %213, %211, %215 : vector<8x32xi1>, vector<8x32xf32>
    %217 = vector.extract_strided_slice %206 {offsets = [0, 32], sizes = [32, 32], strides = [1, 1]} : vector<128x64xf32> to vector<32x32xf32>
    %c22 = arith.constant 22 : index
    %c0_97 = arith.constant 0 : index
    %218 = vector.load %arg6[%c22, %c0_97] : memref<29x64xf32, #tpu.memory_space<vmem>>, vector<1x32xf32>
    %cst_98 = arith.constant dense<0.000000e+00> : vector<8x32xf32>
    %219 = tpu.matmul %216, %217, %cst_98 {dimension_numbers = #tpu.dot_dimension_numbers<[1], [0], [0], [1], [0, 0, 1, 1], [], []>} : vector<8x32xf32>, vector<32x32xf32>, vector<8x32xf32> -> vector<8x32xf32>
    %220 = vector.broadcast %218 : vector<1x32xf32> to vector<8x32xf32>
    %221 = arith.addf %219, %220 : vector<8x32xf32>
    %cst_99 = arith.constant 0.000000e+00 : f32
    %222 = vector.broadcast %cst_99 : f32 to vector<8x32xf32>
    %223 = arith.cmpf ogt, %221, %222 : vector<8x32xf32>
    %cst_100 = arith.constant 0.00999999977 : f32
    %224 = vector.broadcast %cst_100 : f32 to vector<8x32xf32>
    %225 = arith.mulf %224, %221 : vector<8x32xf32>
    %226 = arith.select %223, %221, %225 : vector<8x32xi1>, vector<8x32xf32>
    %cst_101 = arith.constant dense<0.000000e+00> : vector<32xf32>
    %227 = vector.multi_reduction <add>, %226, %cst_101 [0] : vector<8x32xf32> to vector<32xf32>
    %228 = vector.shape_cast %227 : vector<32xf32> to vector<1x32xf32>
    %cst_102 = arith.constant 8.000000e+00 : f32
    %229 = vector.broadcast %cst_102 : f32 to vector<1x32xf32>
    %230 = arith.divf %228, %229 : vector<1x32xf32>
    %231 = vector.broadcast %230 : vector<1x32xf32> to vector<8x32xf32>
    %232 = arith.subf %226, %231 : vector<8x32xf32>
    %233 = arith.mulf %232, %232 : vector<8x32xf32>
    %cst_103 = arith.constant dense<0.000000e+00> : vector<32xf32>
    %234 = vector.multi_reduction <add>, %233, %cst_103 [0] : vector<8x32xf32> to vector<32xf32>
    %235 = vector.shape_cast %234 : vector<32xf32> to vector<1x32xf32>
    %cst_104 = arith.constant 8.000000e+00 : f32
    %236 = vector.broadcast %cst_104 : f32 to vector<1x32xf32>
    %237 = arith.divf %235, %236 : vector<1x32xf32>
    %238 = vector.broadcast %230 : vector<1x32xf32> to vector<8x32xf32>
    %239 = arith.subf %226, %238 : vector<8x32xf32>
    %cst_105 = arith.constant 9.99999974E-6 : f32
    %240 = vector.broadcast %cst_105 : f32 to vector<1x32xf32>
    %241 = arith.addf %237, %240 : vector<1x32xf32>
    %242 = math.rsqrt %241 : vector<1x32xf32>
    %243 = vector.broadcast %242 : vector<1x32xf32> to vector<8x32xf32>
    %244 = arith.mulf %239, %243 : vector<8x32xf32>
    %c23 = arith.constant 23 : index
    %c0_106 = arith.constant 0 : index
    %245 = vector.load %arg6[%c23, %c0_106] : memref<29x64xf32, #tpu.memory_space<vmem>>, vector<1x32xf32>
    %246 = vector.broadcast %245 : vector<1x32xf32> to vector<8x32xf32>
    %247 = arith.mulf %244, %246 : vector<8x32xf32>
    %c24 = arith.constant 24 : index
    %c0_107 = arith.constant 0 : index
    %248 = vector.load %arg6[%c24, %c0_107] : memref<29x64xf32, #tpu.memory_space<vmem>>, vector<1x32xf32>
    %249 = vector.broadcast %248 : vector<1x32xf32> to vector<8x32xf32>
    %250 = arith.addf %247, %249 : vector<8x32xf32>
    %251 = vector.extract_strided_slice %206 {offsets = [32, 0], sizes = [32, 64], strides = [1, 1]} : vector<128x64xf32> to vector<32x64xf32>
    %c25 = arith.constant 25 : index
    %c0_108 = arith.constant 0 : index
    %252 = vector.load %arg6[%c25, %c0_108] : memref<29x64xf32, #tpu.memory_space<vmem>>, vector<1x64xf32>
    %cst_109 = arith.constant dense<0.000000e+00> : vector<8x64xf32>
    %253 = tpu.matmul %203, %251, %cst_109 {dimension_numbers = #tpu.dot_dimension_numbers<[1], [0], [0], [1], [0, 0, 1, 1], [], []>} : vector<8x32xf32>, vector<32x64xf32>, vector<8x64xf32> -> vector<8x64xf32>
    %254 = vector.broadcast %252 : vector<1x64xf32> to vector<8x64xf32>
    %255 = arith.addf %253, %254 : vector<8x64xf32>
    %cst_110 = arith.constant 0.000000e+00 : f32
    %256 = vector.broadcast %cst_110 : f32 to vector<8x64xf32>
    %257 = arith.cmpf ogt, %255, %256 : vector<8x64xf32>
    %cst_111 = arith.constant 0.00999999977 : f32
    %258 = vector.broadcast %cst_111 : f32 to vector<8x64xf32>
    %259 = arith.mulf %258, %255 : vector<8x64xf32>
    %260 = arith.select %257, %255, %259 : vector<8x64xi1>, vector<8x64xf32>
    %261 = vector.extract_strided_slice %206 {offsets = [64, 0], sizes = [64, 64], strides = [1, 1]} : vector<128x64xf32> to vector<64x64xf32>
    %c26 = arith.constant 26 : index
    %c0_112 = arith.constant 0 : index
    %262 = vector.load %arg6[%c26, %c0_112] : memref<29x64xf32, #tpu.memory_space<vmem>>, vector<1x64xf32>
    %cst_113 = arith.constant dense<0.000000e+00> : vector<8x64xf32>
    %263 = tpu.matmul %260, %261, %cst_113 {dimension_numbers = #tpu.dot_dimension_numbers<[1], [0], [0], [1], [0, 0, 1, 1], [], []>} : vector<8x64xf32>, vector<64x64xf32>, vector<8x64xf32> -> vector<8x64xf32>
    %264 = vector.broadcast %262 : vector<1x64xf32> to vector<8x64xf32>
    %265 = arith.addf %263, %264 : vector<8x64xf32>
    %cst_114 = arith.constant 0.000000e+00 : f32
    %266 = vector.broadcast %cst_114 : f32 to vector<8x64xf32>
    %267 = arith.cmpf ogt, %265, %266 : vector<8x64xf32>
    %cst_115 = arith.constant 0.00999999977 : f32
    %268 = vector.broadcast %cst_115 : f32 to vector<8x64xf32>
    %269 = arith.mulf %268, %265 : vector<8x64xf32>
    %270 = arith.select %267, %265, %269 : vector<8x64xi1>, vector<8x64xf32>
    %cst_116 = arith.constant dense<0.000000e+00> : vector<64xf32>
    %271 = vector.multi_reduction <add>, %270, %cst_116 [0] : vector<8x64xf32> to vector<64xf32>
    %272 = vector.shape_cast %271 : vector<64xf32> to vector<1x64xf32>
    %cst_117 = arith.constant 8.000000e+00 : f32
    %273 = vector.broadcast %cst_117 : f32 to vector<1x64xf32>
    %274 = arith.divf %272, %273 : vector<1x64xf32>
    %275 = vector.broadcast %274 : vector<1x64xf32> to vector<8x64xf32>
    %276 = arith.subf %270, %275 : vector<8x64xf32>
    %277 = arith.mulf %276, %276 : vector<8x64xf32>
    %cst_118 = arith.constant dense<0.000000e+00> : vector<64xf32>
    %278 = vector.multi_reduction <add>, %277, %cst_118 [0] : vector<8x64xf32> to vector<64xf32>
    %279 = vector.shape_cast %278 : vector<64xf32> to vector<1x64xf32>
    %cst_119 = arith.constant 8.000000e+00 : f32
    %280 = vector.broadcast %cst_119 : f32 to vector<1x64xf32>
    %281 = arith.divf %279, %280 : vector<1x64xf32>
    %282 = vector.broadcast %274 : vector<1x64xf32> to vector<8x64xf32>
    %283 = arith.subf %270, %282 : vector<8x64xf32>
    %cst_120 = arith.constant 9.99999974E-6 : f32
    %284 = vector.broadcast %cst_120 : f32 to vector<1x64xf32>
    %285 = arith.addf %281, %284 : vector<1x64xf32>
    %286 = math.rsqrt %285 : vector<1x64xf32>
    %287 = vector.broadcast %286 : vector<1x64xf32> to vector<8x64xf32>
    %288 = arith.mulf %283, %287 : vector<8x64xf32>
    %c27 = arith.constant 27 : index
    %c0_121 = arith.constant 0 : index
    %289 = vector.load %arg6[%c27, %c0_121] : memref<29x64xf32, #tpu.memory_space<vmem>>, vector<1x64xf32>
    %290 = vector.broadcast %289 : vector<1x64xf32> to vector<8x64xf32>
    %291 = arith.mulf %288, %290 : vector<8x64xf32>
    %c28 = arith.constant 28 : index
    %c0_122 = arith.constant 0 : index
    %292 = vector.load %arg6[%c28, %c0_122] : memref<29x64xf32, #tpu.memory_space<vmem>>, vector<1x64xf32>
    %293 = vector.broadcast %292 : vector<1x64xf32> to vector<8x64xf32>
    %294 = arith.addf %291, %293 : vector<8x64xf32>
    %295 = vector.extract_strided_slice %294 {offsets = [0, 0], sizes = [8, 32], strides = [1, 1]} : vector<8x64xf32> to vector<8x32xf32>
    %296 = vector.extract_strided_slice %294 {offsets = [0, 32], sizes = [8, 32], strides = [1, 1]} : vector<8x64xf32> to vector<8x32xf32>
    %cst_123 = arith.constant dense<0.000000e+00> : vector<8x8xf32>
    %297 = tpu.matmul %250, %295, %cst_123 {dimension_numbers = #tpu.dot_dimension_numbers<[1], [1], [0], [0], [0, 0, 1, 0], [], []>} : vector<8x32xf32>, vector<8x32xf32>, vector<8x8xf32> -> vector<8x8xf32>
    %cst_124 = arith.constant 0.176776692 : f32
    %298 = vector.broadcast %cst_124 : f32 to vector<8x8xf32>
    %299 = arith.mulf %297, %298 : vector<8x8xf32>
    %300 = arith.mulf %204, %299 : vector<8x8xf32>
    %cst_125 = arith.constant dense<0xFF800000> : vector<8xf32>
    %301 = vector.multi_reduction <maximumf>, %300, %cst_125 [1] : vector<8x8xf32> to vector<8xf32>
    %302 = vector.shape_cast %301 : vector<8xf32> to vector<8x1xf32>
    %303 = vector.broadcast %302 : vector<8x1xf32> to vector<8x8xf32>
    %304 = arith.subf %300, %303 : vector<8x8xf32>
    %305 = math.exp %304 : vector<8x8xf32>
    %cst_126 = arith.constant dense<0.000000e+00> : vector<8xf32>
    %306 = vector.multi_reduction <add>, %305, %cst_126 [1] : vector<8x8xf32> to vector<8xf32>
    %307 = vector.shape_cast %306 : vector<8xf32> to vector<8x1xf32>
    %308 = vector.broadcast %307 : vector<8x1xf32> to vector<8x8xf32>
    %309 = arith.divf %305, %308 : vector<8x8xf32>
    %cst_127 = arith.constant dense<0.000000e+00> : vector<8x32xf32>
    %310 = tpu.matmul %309, %296, %cst_127 {dimension_numbers = #tpu.dot_dimension_numbers<[1], [0], [0], [1], [0, 0, 1, 1], [], []>} : vector<8x8xf32>, vector<8x32xf32>, vector<8x32xf32> -> vector<8x32xf32>
    %311 = arith.addf %310, %35 : vector<8x32xf32>
    %c9 = arith.constant 9 : index
    %c0_128 = arith.constant 0 : index
    %312 = vector.load %arg6[%c9, %c0_128] : memref<29x64xf32, #tpu.memory_space<vmem>>, vector<1x32xf32>
    %c10 = arith.constant 10 : index
    %c0_129 = arith.constant 0 : index
    %313 = vector.load %arg6[%c10, %c0_129] : memref<29x64xf32, #tpu.memory_space<vmem>>, vector<1x32xf32>
    %cst_130 = arith.constant dense<0.000000e+00> : vector<8xf32>
    %314 = vector.multi_reduction <add>, %311, %cst_130 [1] : vector<8x32xf32> to vector<8xf32>
    %315 = vector.shape_cast %314 : vector<8xf32> to vector<8x1xf32>
    %cst_131 = arith.constant 3.200000e+01 : f32
    %316 = vector.broadcast %cst_131 : f32 to vector<8x1xf32>
    %317 = arith.divf %315, %316 : vector<8x1xf32>
    %318 = vector.broadcast %317 : vector<8x1xf32> to vector<8x32xf32>
    %319 = arith.subf %311, %318 : vector<8x32xf32>
    %320 = arith.mulf %319, %319 : vector<8x32xf32>
    %cst_132 = arith.constant dense<0.000000e+00> : vector<8xf32>
    %321 = vector.multi_reduction <add>, %320, %cst_132 [1] : vector<8x32xf32> to vector<8xf32>
    %322 = vector.shape_cast %321 : vector<8xf32> to vector<8x1xf32>
    %cst_133 = arith.constant 3.200000e+01 : f32
    %323 = vector.broadcast %cst_133 : f32 to vector<8x1xf32>
    %324 = arith.divf %322, %323 : vector<8x1xf32>
    %325 = vector.broadcast %317 : vector<8x1xf32> to vector<8x32xf32>
    %326 = arith.subf %311, %325 : vector<8x32xf32>
    %cst_134 = arith.constant 9.99999974E-6 : f32
    %327 = vector.broadcast %cst_134 : f32 to vector<8x1xf32>
    %328 = arith.addf %324, %327 : vector<8x1xf32>
    %329 = math.rsqrt %328 : vector<8x1xf32>
    %330 = vector.broadcast %329 : vector<8x1xf32> to vector<8x32xf32>
    %331 = arith.mulf %326, %330 : vector<8x32xf32>
    %332 = vector.broadcast %312 : vector<1x32xf32> to vector<8x32xf32>
    %333 = arith.mulf %331, %332 : vector<8x32xf32>
    %334 = vector.broadcast %313 : vector<1x32xf32> to vector<8x32xf32>
    %335 = arith.addf %333, %334 : vector<8x32xf32>
    %cst_135 = arith.constant dense<0.000000e+00> : vector<8x32xf32>
    %336 = tpu.matmul %335, %37, %cst_135 {dimension_numbers = #tpu.dot_dimension_numbers<[1], [0], [0], [1], [0, 0, 1, 1], [], []>} : vector<8x32xf32>, vector<32x32xf32>, vector<8x32xf32> -> vector<8x32xf32>
    %337 = vector.broadcast %38 : vector<1x32xf32> to vector<8x32xf32>
    %338 = arith.addf %336, %337 : vector<8x32xf32>
    %cst_136 = arith.constant 0.000000e+00 : f32
    %339 = vector.broadcast %cst_136 : f32 to vector<8x32xf32>
    %340 = arith.cmpf ogt, %338, %339 : vector<8x32xf32>
    %cst_137 = arith.constant 0.00999999977 : f32
    %341 = vector.broadcast %cst_137 : f32 to vector<8x32xf32>
    %342 = arith.mulf %341, %338 : vector<8x32xf32>
    %343 = arith.select %340, %338, %342 : vector<8x32xi1>, vector<8x32xf32>
    %344 = arith.addf %335, %343 : vector<8x32xf32>
    %c11 = arith.constant 11 : index
    %c0_138 = arith.constant 0 : index
    %345 = vector.load %arg6[%c11, %c0_138] : memref<29x64xf32, #tpu.memory_space<vmem>>, vector<1x32xf32>
    %c12 = arith.constant 12 : index
    %c0_139 = arith.constant 0 : index
    %346 = vector.load %arg6[%c12, %c0_139] : memref<29x64xf32, #tpu.memory_space<vmem>>, vector<1x32xf32>
    %cst_140 = arith.constant dense<0.000000e+00> : vector<8xf32>
    %347 = vector.multi_reduction <add>, %344, %cst_140 [1] : vector<8x32xf32> to vector<8xf32>
    %348 = vector.shape_cast %347 : vector<8xf32> to vector<8x1xf32>
    %cst_141 = arith.constant 3.200000e+01 : f32
    %349 = vector.broadcast %cst_141 : f32 to vector<8x1xf32>
    %350 = arith.divf %348, %349 : vector<8x1xf32>
    %351 = vector.broadcast %350 : vector<8x1xf32> to vector<8x32xf32>
    %352 = arith.subf %344, %351 : vector<8x32xf32>
    %353 = arith.mulf %352, %352 : vector<8x32xf32>
    %cst_142 = arith.constant dense<0.000000e+00> : vector<8xf32>
    %354 = vector.multi_reduction <add>, %353, %cst_142 [1] : vector<8x32xf32> to vector<8xf32>
    %355 = vector.shape_cast %354 : vector<8xf32> to vector<8x1xf32>
    %cst_143 = arith.constant 3.200000e+01 : f32
    %356 = vector.broadcast %cst_143 : f32 to vector<8x1xf32>
    %357 = arith.divf %355, %356 : vector<8x1xf32>
    %358 = vector.broadcast %350 : vector<8x1xf32> to vector<8x32xf32>
    %359 = arith.subf %344, %358 : vector<8x32xf32>
    %cst_144 = arith.constant 9.99999974E-6 : f32
    %360 = vector.broadcast %cst_144 : f32 to vector<8x1xf32>
    %361 = arith.addf %357, %360 : vector<8x1xf32>
    %362 = math.rsqrt %361 : vector<8x1xf32>
    %363 = vector.broadcast %362 : vector<8x1xf32> to vector<8x32xf32>
    %364 = arith.mulf %359, %363 : vector<8x32xf32>
    %365 = vector.broadcast %345 : vector<1x32xf32> to vector<8x32xf32>
    %366 = arith.mulf %364, %365 : vector<8x32xf32>
    %367 = vector.broadcast %346 : vector<1x32xf32> to vector<8x32xf32>
    %368 = arith.addf %366, %367 : vector<8x32xf32>
    %c0_145 = arith.constant 0 : index
    %c0_146 = arith.constant 0 : index
    %369 = vector.load %arg7[%c0_145, %c0_146] : memref<16x32xf32, #tpu.memory_space<vmem>>, vector<8x32xf32>
    tpu.vector_store %arg7[%c0_145, %c0_146], %203 {strides = array<i32>} : memref<16x32xf32, #tpu.memory_space<vmem>>, vector<8x32xf32>,
    %c8_147 = arith.constant 8 : index
    %c0_148 = arith.constant 0 : index
    %370 = vector.load %arg7[%c8_147, %c0_148] : memref<16x32xf32, #tpu.memory_space<vmem>>, vector<8x32xf32>
    tpu.vector_store %arg7[%c8_147, %c0_148], %368 {strides = array<i32>} : memref<16x32xf32, #tpu.memory_space<vmem>>, vector<8x32xf32>,
    return
  }
}

</mosaic_0001>

<bundles_post_ra>
// kernel: att_block_forward.1
= control target key start
LH: loop header
LB: loop body
LE: loop exit
PB: predicated region body
PF: predicated region fallthrough
CT: control target
= control target key end

     0   :  { %v2315_v0 = vmov 0.0|0.0   ;;  %vm2316_vm0 = vmmov 0   ;;  %v2317_v4 = vmov 0.0   ;;  %vm36_vm1 = vcmask 261120   ;;  %s2318_s23 = smov 96   ;;  %s2780_s4 = inlined_call_operand.vmem [shape: f32[5,32,32], index: 4, kind: input, shape index: {}]   ;;  %s2781_s2 = inlined_call_operand.vmem [shape: f32[8,32], index: 2, kind: input, shape index: {}]   ;;  %s2782_s3 = inlined_call_operand.vmem [shape: f32[8,32], index: 3, kind: input, shape index: {}]   ;;  %s2783_s5 = inlined_call_operand.vmem [shape: f32[2,128,64], index: 5, kind: input, shape index: {}]   ;;  %s2784_s6 = inlined_call_operand.vmem [shape: f32[29,64], index: 6, kind: input, shape index: {}]   ;;  %s2785_s0 = inlined_call_operand.vmem [shape: f32[8,8], index: 0, kind: input, shape index: {}]   ;;  %s2786_s7 = inlined_call_operand.vmem [shape: f32[16,32], index: 7, kind: output, shape index: {}]   ;;  %s2787_s1 = inlined_call_operand.vmem [shape: f32[8,8], index: 1, kind: input, shape index: {}]  }
   0x1   :  { %2171 = vmatprep.subr.bf16.mxu0 %v2315_v0  ;;  %v27_v1 = vld [vmem:[%s2780_s4] sm:$0xff]  ;;  %v28_v2 = vld [vmem:[%s2780_s4 + $0x8] sm:$0xff]  ;;  %v29_v3 = vld [vmem:[%s2780_s4 + $0x10] sm:$0xff]  ;;  %1989 = vmatprep.mubr.msk.f32.mxu0 %vm2316_vm0, %v2317_v4  ;;  %vm687_vm6 = vcmask 523264   ;;  %vm875_vm9 = vcmask 64512  }
   0x2   :  { %v2172_v5 = vpack.c.bf16 %v28_v2, %v27_v1  ;;  %v30_v6 = vld [vmem:[%s2780_s4 + $0x18] sm:$0xff]  ;;  %2177 = vmatprep.subr.bf16.mxu1 %v2315_v0  ;;  %2000 = vmatprep.mubr.msk.f32.mxu1 %vm2316_vm0, %v2317_v4  ;;  %v1816_v8 = vld [vmem:[%s2780_s4 + $0x20] sm:$0xff]  ;;  %v1817_v9 = vld [vmem:[%s2780_s4 + $0x28] sm:$0xff] }
   0x3   :  { %v2175_v7 = vpack.c.bf16 %v30_v6, %v29_v3  ;;  %v1822_v10 = vld [vmem:[%s2780_s4 + $0x40] sm:$0xff]  ;;  %v1823_v11 = vld [vmem:[%s2780_s4 + $0x48] sm:$0xff]  ;;  %v2178_v12 = vpack.c.bf16 %v1817_v9, %v1816_v8  ;;  %v1824_v15 = vld [vmem:[%s2780_s4 + $0x50] sm:$0xff] }
   0x4   :  { %2173 = vmatpush3.bf16.msra.mxu0 %v2172_v5  ;;  %v26_v13 = vld [vmem:[%s2781_s2] sm:$0xff]  ;;  %v2184_v14 = vpack.c.bf16 %v1823_v11, %v1822_v10  ;;  %v1825_v16 = vld [vmem:[%s2780_s4 + $0x58] sm:$0xff]  ;;  %v1818_v19 = vld [vmem:[%s2780_s4 + $0x30] sm:$0xff] }
   0x5   :  { %2174 = vmatprep.subr.bf16.mxu0 %v2315_v0  ;;  %2179 = vmatpush3.bf16.msra.mxu1 %v2178_v12  ;;  %v2187_v17 = vpack.c.bf16 %v1825_v16, %v1824_v15  ;;  %v196_v18 = vld [vmem:[%s2782_s3] sm:$0xff]  ;;  %v1819_v20 = vld [vmem:[%s2780_s4 + $0x38] sm:$0xff]  ;;  %v374_v23 = vld [vmem:[%s2783_s5 + $0x8] sm:$0xff] }
   0x6   :  { %2180 = vmatprep.subr.bf16.mxu1 %v2315_v0  ;;  %v2181_v21 = vpack.c.bf16 %v1819_v20, %v1818_v19  ;;  %v373_v22 = vld [vmem:[%s2783_s5] sm:$0xff]  ;;  %v1829_v26 = vld [vmem:[%s2780_s4 + $0x68] sm:$0xff]  ;;  %v1830_v32 = vld [vmem:[%s2780_s4 + $0x70] sm:$0xff] }
   0x7   :  { %v2196_v24 = vpack.c.bf16 %v374_v23, %v373_v22  ;;  %v1828_v25 = vld [vmem:[%s2780_s4 + $0x60] sm:$0xff]  ;;  %v1831_v33 = vld [vmem:[%s2780_s4 + $0x78] sm:$0xff]  ;;  %v375_v39 = vld [vmem:[%s2783_s5 + $0x10] sm:$0xff]  ;;  %v2271_v42 = vpack.i.bf16 %v374_v23, %v373_v22 }
   0x8   :  { %2176 = vmatpush3.bf16.msra.mxu0 %v2175_v7  ;;  %v1814_v27 = vld [vmem:[%s2784_s6] ss:$0 sm:$0xff]  ;;  %v2190_v29 = vpack.c.bf16 %v1829_v26, %v1828_v25  ;;  %v2193_v34 = vpack.c.bf16 %v1831_v33, %v1830_v32  ;;  %v1826_v35 = vld [vmem:[%s2784_s6 + $0x2] ss:$0 sm:$0xff]  ;;  %v376_v40 = vld [vmem:[%s2783_s5 + $0x18] sm:$0xff] }
   0x9   :  { %2183 = vmatprep.subr.bf16.mxu0 %v2315_v0  ;;  %2182 = vmatpush3.bf16.msra.mxu1 %v2181_v21  ;;  %v2199_v41 = vpack.c.bf16 %v376_v40, %v375_v39  ;;  %v2276_v43 = vpack.i.bf16 %v376_v40, %v375_v39  ;;  %v1820_v44 = vld [vmem:[%s2784_s6 + $0x1] ss:$0 sm:$0xff]  ;;  %v378_v46 = vld [vmem:[%s2783_s5 + $0x28] sm:$0xff]  ;;  %v379_v55 = vld [vmem:[%s2783_s5 + $0x30] sm:$0xff] }
   0xa   :  { %2189 = vmatprep.subr.bf16.mxu1 %v2315_v0  ;;  %2272 = vrot.lane.b32.xlu0 %v2271_v42, %s2318_s23  ;;  %v377_v45 = vld [vmem:[%s2783_s5 + $0x20] sm:$0xff]  ;;  %v380_v56 = vld [vmem:[%s2783_s5 + $0x38] sm:$0xff]  ;;  %v1838_v8 = vld [vmem:[%s2784_s6 + $0xd] ss:$0 sm:$0xff] }
   0xb   :  { %1990 = vmatmul.mubr.msk.f32.vlgmr.msra.gmra.mrb[0].mxu0 %vm36_vm1, %v26_v13  ;;  %v2208_v50 = vpack.c.bf16 %v378_v46, %v377_v45  ;;  %v1832_v59 = vld [vmem:[%s2784_s6 + $0x3] ss:$0 sm:$0xff]  ;;  %v2211_v61 = vpack.c.bf16 %v380_v56, %v379_v55  ;;  %v382_v11 = vld [vmem:[%s2783_s5 + $0x48] sm:$0xff]  ;;  %v383_v16 = vld [vmem:[%s2783_s5 + $0x50] sm:$0xff] }
   0xc   :  { %2185 = vmatpush3.bf16.msra.mxu0 %v2184_v14  ;;  %2011 = vmatprep.mubr.msk.f32.mxu0 %vm2316_vm0, %v2317_v4  ;;  %v381_v10 = vld [vmem:[%s2783_s5 + $0x40] sm:$0xff]  ;;  %v386_v22 = vld [vmem:[%s2783_s5 + $0x68] sm:$0xff]  ;;  %v387_v26 = vld [vmem:[%s2783_s5 + $0x70] sm:$0xff] }
   0xd   :  { %2186 = vmatprep.subr.bf16.mxu0 %v2315_v0  ;;  %v2214_v15 = vpack.c.bf16 %v382_v11, %v381_v10  ;;  %v385_v21 = vld [vmem:[%s2783_s5 + $0x60] sm:$0xff] }
   0xe   :  { %2277 = vrot.lane.b32.xlu0 %v2276_v43, %s2318_s23  ;;  %v2220_v25 = vpack.c.bf16 %v386_v22, %v385_v21 }
  0x10   :  { %2188 = vmatpush3.bf16.msra.mxu0 %v2187_v17  ;;  %v384_v17 = vld [vmem:[%s2783_s5 + $0x58] sm:$0xff] }
  0x11   :  { %2195 = vmatprep.subr.bf16.mxu0 %v2315_v0  ;;  %v2217_v19 = vpack.c.bf16 %v384_v17, %v383_v16 }
  0x13   :  { %2012 = vmatmul.mubr.msk.f32.vlgmr.msra.gmra.mrb[2].mxu0 %vm36_vm1, %v196_v18 }
  0x14   :  { %2033 = vmatprep.mubr.msk.f32.mxu0 %vm2316_vm0, %v2317_v4  ;;  %2197 = vmatpush3.bf16.msra.mxu0 %v2196_v24  ;;  %v1844_v24 = vld [vmem:[%s2784_s6 + $0x11] ss:$0 sm:$0xff] }
  0x15   :  { %2198 = vmatprep.subr.bf16.mxu0 %v2315_v0 }
  0x18   :  { %2200 = vmatpush3.bf16.msra.mxu0 %v2199_v41 }
  0x19   :  { %2207 = vmatprep.subr.bf16.mxu0 %v2315_v0 }
  0x7c   :  { %v2273_v51 = vpop.permute.xlu0 %2272 }
  0x7d   :  { %v2275_v53 = vunpack.i.h.bf16 %v2273_v51  ;;  %v2274_v54 = vunpack.i.l.bf16 %v2273_v51 }
  0x7f   :  { %v2202_v58 = vpack.c.bf16 %v2275_v53, %v2274_v54 }
  0x80   :  { %v2278_v60 = vpop.permute.xlu0 %2277 }
  0x81   :  { %v2280_v62 = vunpack.i.h.bf16 %v2278_v60  ;;  %v2279_v63 = vunpack.i.l.bf16 %v2278_v60 }
  0x83   :  { %v2205_v5 = vpack.c.bf16 %v2280_v62, %v2279_v63 }
  0xde   :  { %v106_v28 = vpop.f32.mrb[0].mxu0 }
  0xdf   :  { %v107_v30 = vadd.f32 %v1814_v27, %v106_v28  ;;  %v1991_v31 = vpop.f32.mrb[1].mxu0  ;;  %v388_v27 = vld [vmem:[%s2783_s5 + $0x78] sm:$0xff] }
  0xe0   :  { %v2539_v31 = vld [vmem:[%s2783_s5 + $0x88] sm:$0xff] }
  0xe1   :  { %2001 = vmatmul.mubr.msk.f32.vlgmr.msra.gmra.mrb[0].mxu1 %vm36_vm1, %v107_v30  ;;  %v2534_v30 = vld [vmem:[%s2783_s5 + $0x80] sm:$0xff] }
  0xe2   :  { %2191 = vmatpush3.bf16.msra.mxu1 %v2190_v29  ;;  %2022 = vmatprep.mubr.msk.f32.mxu1 %vm2316_vm0, %v2317_v4  ;;  %v2223_v29 = vpack.c.bf16 %v388_v27, %v387_v26  ;;  %v2232_v33 = vpack.c.bf16 %v2539_v31, %v2534_v30 }
  0xe3   :  { %2192 = vmatprep.subr.bf16.mxu1 %v2315_v0 }
  0xe6   :  { %v276_v36 = vpop.f32.mrb[2].mxu0  ;;  %2194 = vmatpush3.bf16.msra.mxu1 %v2193_v34  ;;  %v2547_v34 = vld [vmem:[%s2783_s5 + $0x90] sm:$0xff] }
  0xe7   :  { %v277_v37 = vadd.f32 %v1826_v35, %v276_v36  ;;  %v2013_v38 = vpop.f32.mrb[3].mxu0  ;;  %2201 = vmatprep.subr.bf16.mxu1 %v2315_v0  ;;  %v2552_v35 = vld [vmem:[%s2783_s5 + $0x98] sm:$0xff] }
  0xe8   :  { %v1840_v38 = vld [vmem:[%s2784_s6 + $0xe] ss:$0 sm:$0xff] }
  0xe9   :  { %2023 = vmatmul.mubr.msk.f32.vlgmr.msra.gmra.mrb[2].mxu1 %vm36_vm1, %v277_v37  ;;  %v2235_v37 = vpack.c.bf16 %v2552_v35, %v2547_v34 }
  0xea   :  { %2044 = vmatprep.mubr.msk.f32.mxu1 %vm2316_vm0, %v2317_v4  ;;  %2203 = vmatpush3.bf16.msra.mxu1 %v2202_v58 }
  0xeb   :  { %2204 = vmatprep.subr.bf16.mxu1 %v2315_v0 }
  0xee   :  { %2206 = vmatpush3.bf16.msra.mxu1 %v2205_v5 }
  0xef   :  { %2213 = vmatprep.subr.bf16.mxu1 %v2315_v0 }
 0x1b4   :  { %v189_v47 = vpop.f32.mrb[0].mxu1 }
 0x1b5   :  { %v190_v48 = vadd.f32 %v1820_v44, %v189_v47  ;;  %v2002_v49 = vpop.f32.mrb[1].mxu1 }
 0x1b6   :  { %v1846_v49 = vld [vmem:[%s2784_s6 + $0x12] ss:$0 sm:$0xff] }
 0x1b7   :  { %vm193_vm2 = vcmp.gt.f32.partialorder %v190_v48, 0.0  ;;  %v194_v52 = vmul.f32 0.01, %v190_v48 }
 0x1b9   :  { %v2476_v57 = vsel %vm193_vm2, %v190_v48, %v194_v52 }
 0x1ba   :  { %2034 = vmatmul.mubr.msk.f32.vlgmr.msra.gmra.mrb[4].mxu0 %vm36_vm1, %v2476_v57 }
 0x1bb   :  { %2209 = vmatpush3.bf16.msra.mxu0 %v2208_v50  ;;  %2055 = vmatprep.mubr.msk.f32.mxu0 %vm2316_vm0, %v2317_v4 }
 0x1bc   :  { %v359_v1 = vpop.f32.mrb[2].mxu1  ;;  %2210 = vmatprep.subr.bf16.mxu0 %v2315_v0 }
 0x1bd   :  { %v360_v2 = vadd.f32 %v1832_v59, %v359_v1  ;;  %v2024_v3 = vpop.f32.mrb[3].mxu1 }
 0x1bf   :  { %vm363_vm3 = vcmp.gt.f32.partialorder %v360_v2, 0.0  ;;  %v364_v6 = vmul.f32 0.01, %v360_v2  ;;  %2212 = vmatpush3.bf16.msra.mxu0 %v2211_v61 }
 0x1c0   :  { %2077 = vmatprep.subr.mxu0 %v2317_v4 }
 0x1c1   :  { %v2488_v7 = vsel %vm363_vm3, %v360_v2, %v364_v6 }
 0x1c2   :  { %2056 = vmatmul.mubr.msk.f32.vlgmr.msra.gmra.mrb[6].mxu0 %vm36_vm1, %v2488_v7 }
 0x1c3   :  { %2079 = vmatprep.mubr.msk.f32.mxu0 %vm2316_vm0, %v2317_v4 }
 0x28d   :  { %v463_v9 = vpop.f32.mrb[4].mxu0 }
 0x28e   :  { %v464_v12 = vadd.f32 %v1838_v8, %v463_v9  ;;  %v2035_v13 = vpop.f32.mrb[5].mxu0 }
 0x290   :  { %vm467_vm4 = vcmp.gt.f32.partialorder %v464_v12, 0.0  ;;  %v468_v14 = vmul.f32 0.01, %v464_v12 }
 0x292   :  { %v469_v18 = vsel %vm467_vm4, %v464_v12, %v468_v14 }
 0x293   :  { %2045 = vmatmul.mubr.msk.f32.vlgmr.msra.gmra.mrb[4].mxu1 %vm36_vm1, %v469_v18 }
 0x294   :  { %2215 = vmatpush3.bf16.msra.mxu1 %v2214_v15  ;;  %2074 = vmatprep.mubr.msk.f32.mxu1 %vm2316_vm0, %v2317_v4 }
 0x295   :  { %2216 = vmatprep.subr.bf16.mxu1 %v2315_v0  ;;  %v675_v20 = vpop.f32.mrb[6].mxu0 }
 0x296   :  { %v2057_v23 = vpop.f32.mrb[7].mxu0  ;;  %v676_v28 = vadd.f32 %v1844_v24, %v675_v20 }
 0x298   :  { %2218 = vmatpush3.bf16.msra.mxu1 %v2217_v19  ;;  %v680_v32 = vmul.f32 0.01, %v676_v28  ;;  %vm679_vm5 = vcmp.gt.f32.partialorder %v676_v28, 0.0 }
 0x299   :  { %2219 = vmatprep.subr.bf16.mxu1 %v2315_v0 }
 0x29a   :  { %v681_v36 = vsel %vm679_vm5, %v676_v28, %v680_v32 }
 0x29c   :  { %2221 = vmatpush3.bf16.msra.mxu1 %v2220_v25 }
 0x29d   :  { %2222 = vmatprep.subr.bf16.mxu1 %v2315_v0 }
 0x2a0   :  { %2224 = vmatpush3.bf16.msra.mxu1 %v2223_v29 }
 0x2a1   :  { %2231 = vmatprep.subr.bf16.mxu1 %v2315_v0 }
 0x2a3   :  { %2075 = vmatmul.mubr.msk.f32.vlgmr.msra.gmra.mrb[6].mxu1 %vm687_vm6, %v681_v36 }
 0x2a4   :  { %2233 = vmatpush3.bf16.msra.mxu1 %v2232_v33  ;;  %2106 = vmatprep.mubr.msk.f32.mxu1 %vm2316_vm0, %v2317_v4 }
 0x2a5   :  { %2234 = vmatprep.subr.bf16.mxu1 %v2315_v0 }
 0x2a8   :  { %2236 = vmatpush3.bf16.msra.mxu1 %v2235_v37  ;;  %v1848_v37 = vld [vmem:[%s2784_s6 + $0x13] ss:$0 sm:$0xff] }
 0x2a9   :  { %2243 = vmatprep.subr.bf16.mxu1 %v2315_v0 }
 0x2ab   :  { %2107 = vmatmul.mubr.msk.f32.vlgmr.msra.gmra.mrb[8].mxu1 %vm36_vm1, %v2488_v7 }
 0x2ac   :  { %2128 = vmatprep.mubr.msk.f32.mxu1 %vm2316_vm0, %v2317_v4 }
 0x366   :  { %v560_v39 = vpop.f32.mrb[4].mxu1 }
 0x367   :  { %v561_v40 = vadd.f32 %v1840_v38, %v560_v39  ;;  %v2046_v41 = vpop.f32.mrb[5].mxu1  ;;  %v1842_v38 = vld [vmem:[%s2784_s6 + $0xf] ss:$0 sm:$0xff] }
 0x369   :  { %vm564_vm7 = vcmp.gt.f32.partialorder %v561_v40, 0.0  ;;  %v565_v42 = vmul.f32 0.01, %v561_v40 }
 0x36b   :  { %v566_v43 = vsel %vm564_vm7, %v561_v40, %v565_v42  ;;  %v1849_v40 = vld [vmem:[%s2784_s6 + $0x14] ss:$0 sm:$0xff] }
 0x36c   :  { %v567_v44 = vsel %vm36_vm1, %v566_v43, 0.0 }
 0x36d   :  { %v568_v45 = vrot.slane %v567_v44, 4 }
 0x36f   :  { %v569_v46 = vadd.f32 %v568_v45, %v567_v44  ;;  %v1843_v44 = vld [vmem:[%s2784_s6 + $0x10] ss:$0 sm:$0xff] }
 0x371   :  { %v570_v47 = vrot.slane %v569_v46, 2 }
 0x373   :  { %v571_v48 = vadd.f32 %v570_v47, %v569_v46 }
 0x375   :  { %v572_v50 = vrot.slane %v571_v48, 1 }
 0x376   :  { %v757_v51 = vpop.f32.mrb[6].mxu1 }
 0x377   :  { %v573_v52 = vadd.f32 %v572_v50, %v571_v48  ;;  %v758_v53 = vadd.f32 %v1846_v49, %v757_v51  ;;  %v2076_v54 = vpop.f32.mrb[7].mxu1  ;;  %v372_v48 = vld [vmem:[%s2785_s0] sm:$0xff] }
 0x379   :  { %v575_v55 = vmul.f32 0.125, %v573_v52  ;;  %vm761_vm8 = vcmp.gt.f32.partialorder %v758_v53, 0.0  ;;  %v762_v56 = vmul.f32 0.01, %v758_v53 }
 0x37b   :  { %v576_v58 = vsub.f32 %v566_v43, %v575_v55  ;;  %v763_v59 = vsel %vm761_vm8, %v758_v53, %v762_v56 }
 0x37c   :  { %v764_v60 = vsel %vm687_vm6, %v763_v59, 0.0 }
 0x37d   :  { %v577_v61 = vmul.f32 %v576_v58, %v576_v58  ;;  %v765_v62 = vrot.slane %v764_v60, 4 }
 0x37e   :  { %v2573_v63 = vpop.f32.mrb[8].mxu1 }
 0x37f   :  { %v578_v1 = vsel %vm36_vm1, %v577_v61, 0.0  ;;  %v766_v2 = vadd.f32 %v765_v62, %v764_v60  ;;  %v2108_v3 = vpop.f32.mrb[9].mxu1 }
 0x380   :  { %v579_v5 = vrot.slane %v578_v1, 4 }
 0x381   :  { %v767_v6 = vrot.slane %v766_v2, 2 }
 0x382   :  { %v580_v8 = vadd.f32 %v579_v5, %v578_v1 }
 0x383   :  { %v768_v9 = vadd.f32 %v767_v6, %v766_v2 }
 0x384   :  { %v581_v10 = vrot.slane %v580_v8, 2 }
 0x385   :  { %v769_v11 = vrot.slane %v768_v9, 1 }
 0x386   :  { %v582_v13 = vadd.f32 %v581_v10, %v580_v8 }
 0x387   :  { %v770_v12 = vadd.f32 %v769_v11, %v768_v9  ;;  %v1834_v11 = vld [vmem:[%s2780_s4 + $0x80] sm:$0xff] }
 0x388   :  { %v583_v16 = vrot.slane %v582_v13, 1 }
 0x389   :  { %v771_v14 = vmul.f32 0.125, %v770_v12  ;;  %v1835_v12 = vld [vmem:[%s2780_s4 + $0x88] sm:$0xff] }
 0x38a   :  { %v584_v20 = vadd.f32 %v583_v16, %v582_v13  ;;  %v1836_v13 = vld [vmem:[%s2780_s4 + $0x90] sm:$0xff] }
 0x38b   :  { %v772_v15 = vsub.f32 %v763_v59, %v771_v14  ;;  %v1837_v14 = vld [vmem:[%s2780_s4 + $0x98] sm:$0xff] }
 0x38c   :  { %v585_v23 = vmul.f32 0.125, %v584_v20  ;;  %v1853_v20 = vld [vmem:[%s2784_s6 + $0x5] ss:$0 sm:$0xff] }
 0x38d   :  { %v773_v17 = vmul.f32 %v772_v15, %v772_v15 }
 0x38e   :  { %v586_v26 = vadd.f32 1e-05, %v585_v23 }
 0x38f   :  { %v774_v18 = vsel %vm687_vm6, %v773_v17, 0.0 }
 0x390   :  { %v775_v19 = vrot.slane %v774_v18, 4  ;;  %2291 = vrsqrt.f32 %v586_v26 }
 0x392   :  { %v776_v21 = vadd.f32 %v775_v19, %v774_v18 }
 0x394   :  { %v777_v22 = vrot.slane %v776_v21, 2 }
 0x396   :  { %v778_v24 = vadd.f32 %v777_v22, %v776_v21  ;;  %v1854_v22 = vld [vmem:[%s2784_s6 + $0x6] ss:$0 sm:$0xff] }
 0x398   :  { %v779_v25 = vrot.slane %v778_v24, 1 }
 0x39a   :  { %v780_v27 = vadd.f32 %v779_v25, %v778_v24  ;;  %v2292_v32 = vpop.eup %2291  ;;  %v2639_v25 = vld [vmem:[%s2784_s6 + $0x4] ss:$0 sm:$0xff] }
 0x39b   :  { %v588_v36 = vmul.f32 %v2292_v32, %v576_v58 }
 0x39c   :  { %v781_v28 = vmul.f32 0.125, %v780_v27 }
 0x39d   :  { %v594_v42 = vmul.f32 %v1842_v38, %v588_v36 }
 0x39e   :  { %v782_v29 = vadd.f32 1e-05, %v781_v28 }
 0x39f   :  { %v600_v45 = vadd.f32 %v1843_v44, %v594_v42  ;;  %v2281_v42 = vpack.i.bf16 %v2539_v31, %v2534_v30  ;;  %v1863_v44 = vld [vmem:[%s2783_s5 + $0xa0] sm:$0xff]  ;;  %v1865_v30 = vld [vmem:[%s2783_s5 + $0xb0] sm:$0xff]  ;;  %v1866_v31 = vld [vmem:[%s2783_s5 + $0xb8] sm:$0xff] }
 0x3a0   :  { %2293 = vrsqrt.f32 %v782_v29 }
 0x3aa   :  { %v2294_v33 = vpop.eup %2293 }
 0x3ab   :  { %v784_v39 = vmul.f32 %v2294_v33, %v772_v15  ;;  %v2623_v15 = vpack.c.bf16 %v1837_v14, %v1836_v13  ;;  %v1871_v13 = vld [vmem:[%s2783_s5 + $0xe0] sm:$0xff]  ;;  %v1872_v14 = vld [vmem:[%s2783_s5 + $0xe8] sm:$0xff] }
 0x3ad   :  { %v790_v41 = vmul.f32 %v1848_v37, %v784_v39 }
 0x3af   :  { %v796_v43 = vadd.f32 %v1849_v40, %v790_v41 }
 0x3b1   :  { %887 = vrot.lane.b32.xlu0 %v796_v43, %s2318_s23  ;;  %2078 = vmatpush3.xpose.msk.msra.mxu0 %vm36_vm1, %v796_v43  ;;  %v2286_v43 = vpack.i.bf16 %v2552_v35, %v2547_v34  ;;  %v2247_v34 = vpack.c.bf16 %v1866_v31, %v1865_v30 }
 0x3b2   :  { %2082 = vmatprep.subr.mxu0 %v2317_v4 }
 0x3b4   :  { %2080 = vmatmul.mubr.msk.f32.vlgmr.msra.gmra.mrb[8].mxu0 %vm36_vm1, %v600_v45  ;;  %v1864_v45 = vld [vmem:[%s2783_s5 + $0xa8] sm:$0xff] }
 0x3b5   :  { %2084 = vmatprep.mubr.msk.f32.mxu0 %vm2316_vm0, %v2317_v4 }
 0x423   :  { %v888_v46 = vpop.permute.xlu0 %887 }
 0x424   :  { %2083 = vmatpush3.msra.mxu0 %v888_v46  ;;  %v2244_v46 = vpack.c.bf16 %v1864_v45, %v1863_v44 }
 0x425   :  { %2225 = vmatprep.subr.bf16.mxu0 %v2315_v0 }
 0x426   :  { %2245 = vmatpush3.bf16.msra.mxu1 %v2244_v46  ;;  %v1883_v46 = vld [vmem:[%s2784_s6 + $0x1a] ss:$0 sm:$0xff] }
 0x427   :  { %2246 = vmatprep.subr.bf16.mxu1 %v2315_v0 }
 0x42a   :  { %2248 = vmatpush3.bf16.msra.mxu1 %v2247_v34 }
 0x42b   :  { %2150 = vmatprep.subr.mxu1 %v2317_v4 }
 0x487   :  { %v869_v47 = vpop.f32.mrb[8].mxu0 }
 0x488   :  { %v873_v49 = vmul.f32 0.17677669, %v869_v47  ;;  %v2081_v50 = vpop.f32.mrb[9].mxu0 }
 0x48a   :  { %v874_v51 = vmul.f32 %v873_v49, %v372_v48  ;;  %v1875_v49 = vld [vmem:[%s2784_s6 + $0x15] ss:$0 sm:$0xff] }
 0x48c   :  { %v876_v52 = vsel %vm875_vm9, %v874_v51, -inf }
 0x48d   :  { %877 = vmax.xlane.f32.xlu1 %v876_v52 }
 0x51a   :  { %v878_v53 = vpop.xlane.xlu1 %877 }
 0x51b   :  { %v879_v54 = vsub.f32 %v874_v51, %v878_v53  ;;  %v1185_v53 = vadd.f32 %v1875_v49, %v2573_v63 }
 0x51d   :  { %v880_v55 = vmul.f32 1.442695, %v879_v54  ;;  %vm1188_vm11 = vcmp.gt.f32.partialorder %v1185_v53, 0.0 }
 0x51f   :  { %2295 = vpow2.f32 %v880_v55 }
 0x529   :  { %v2296_v56 = vpop.eup %2295 }
 0x52a   :  { %v882_v58 = vsel %vm875_vm9, %v2296_v56, 0.0 }
 0x52b   :  { %883 = vadd.xlane.f32.xlu1 %v882_v58 }
 0x5b8   :  { %v884_v59 = vpop.xlane.xlu1 %883 }
 0x5b9   :  { %2297 = vrcp.f32 %v884_v59  ;;  %v1867_v59 = vld [vmem:[%s2783_s5 + $0xc0] sm:$0xff] }
 0x5c3   :  { %v2298_v60 = vpop.eup %2297 }
 0x5c4   :  { %v886_v61 = vmul.f32 %v2298_v60, %v2296_v56  ;;  %v1868_v60 = vld [vmem:[%s2783_s5 + $0xc8] sm:$0xff] }
 0x5c5   :  { %v2250_v63 = vpack.c.bf16 %v1868_v60, %v1867_v59 }
 0x5c6   :  { %2085 = vmatmul.mubr.msk.f32.vlgmr.msra.gmra.mrb[10].mxu0 %vm875_vm9, %v886_v61  ;;  %v1189_v61 = vmul.f32 0.01, %v1185_v53 }
 0x5c7   :  { %2095 = vmatprep.mubr.msk.f32.mxu0 %vm2316_vm0, %v2317_v4 }
 0x699   :  { %v959_v62 = vpop.f32.mrb[10].mxu0 }
 0x69a   :  { %v960_v1 = vadd.f32 %v959_v62, %v2476_v57  ;;  %v2086_v2 = vpop.f32.mrb[11].mxu0  ;;  %v2613_v57 = vpack.c.bf16 %v1835_v12, %v1834_v11  ;;  %v1870_v11 = vld [vmem:[%s2783_s5 + $0xd8] sm:$0xff] }
 0x69b   :  { %v1190_v2 = vsel %vm1188_vm11, %v1185_v53, %v1189_v61 }
 0x69c   :  { %v965_v3 = vsel %vm36_vm1, %v960_v1, 0.0  ;;  %2227 = vmatpush3.bf16.msra.mxu0 %v2613_v57 }
 0x69d   :  { %966 = vadd.xlane.f32.xlu1 %v965_v3  ;;  %2228 = vmatprep.subr.bf16.mxu0 %v2315_v0  ;;  %v1857_v3 = vld [vmem:[%s2784_s6 + $0x7] ss:$0 sm:$0xff] }
 0x6a0   :  { %2230 = vmatpush3.bf16.msra.mxu0 %v2623_v15 }
 0x6a1   :  { %2237 = vmatprep.subr.bf16.mxu0 %v2315_v0 }
 0x72a   :  { %v967_v5 = vpop.xlane.xlu1 %966 }
 0x72b   :  { %v969_v6 = vmul.f32 0.03125, %v967_v5 }
 0x72d   :  { %v970_v8 = vsub.f32 %v960_v1, %v969_v6  ;;  %v1858_v6 = vld [vmem:[%s2784_s6 + $0x8] ss:$0 sm:$0xff] }
 0x72f   :  { %v971_v9 = vmul.f32 %v970_v8, %v970_v8 }
 0x731   :  { %v972_v10 = vsel %vm36_vm1, %v971_v9, 0.0 }
 0x732   :  { %973 = vadd.xlane.f32.xlu0 %v972_v10  ;;  %v1869_v10 = vld [vmem:[%s2783_s5 + $0xd0] sm:$0xff] }
 0x733   :  { %v2253_v12 = vpack.c.bf16 %v1870_v11, %v1869_v10 }
 0x7bf   :  { %v974_v16 = vpop.xlane.xlu0 %973 }
 0x7c0   :  { %v975_v17 = vmul.f32 0.03125, %v974_v16  ;;  %v2256_v16 = vpack.c.bf16 %v1872_v14, %v1871_v13 }
 0x7c2   :  { %v976_v18 = vadd.f32 1e-05, %v975_v17  ;;  %v1873_v17 = vld [vmem:[%s2783_s5 + $0xf0] sm:$0xff] }
 0x7c4   :  { %2299 = vrsqrt.f32 %v976_v18  ;;  %v1874_v18 = vld [vmem:[%s2783_s5 + $0xf8] sm:$0xff] }
 0x7ce   :  { %v2300_v19 = vpop.eup %2299 }
 0x7cf   :  { %v978_v21 = vmul.f32 %v2300_v19, %v970_v8  ;;  %v2259_v19 = vpack.c.bf16 %v1874_v18, %v1873_v17 }
 0x7d1   :  { %v983_v23 = vmul.f32 %v1853_v20, %v978_v21 }
 0x7d3   :  { %v988_v24 = vadd.f32 %v1854_v22, %v983_v23  ;;  %v1881_v22 = vld [vmem:[%s2784_s6 + $0x19] ss:$0 sm:$0xff] }
 0x7d5   :  { %2096 = vmatmul.mubr.msk.f32.vlgmr.msra.gmra.mrb[12].mxu0 %vm36_vm1, %v988_v24 }
 0x7d6   :  { %2117 = vmatprep.mubr.msk.f32.mxu0 %vm2316_vm0, %v2317_v4 }
 0x8a8   :  { %v1062_v26 = vpop.f32.mrb[12].mxu0 }
 0x8a9   :  { %v1063_v27 = vadd.f32 %v2639_v25, %v1062_v26  ;;  %v2097_v28 = vpop.f32.mrb[13].mxu0 }
 0x8ab   :  { %vm1066_vm10 = vcmp.gt.f32.partialorder %v1063_v27, 0.0  ;;  %v1067_v29 = vmul.f32 0.01, %v1063_v27 }
 0x8ad   :  { %v1068_v32 = vsel %vm1066_vm10, %v1063_v27, %v1067_v29  ;;  %v1877_v29 = vld [vmem:[%s2784_s6 + $0x16] ss:$0 sm:$0xff] }
 0x8ae   :  { %v1069_v33 = vadd.f32 %v1068_v32, %v988_v24 }
 0x8b0   :  { %v1072_v36 = vsel %vm36_vm1, %v1069_v33, 0.0 }
 0x8b1   :  { %1073 = vadd.xlane.f32.xlu1 %v1072_v36 }
 0x93e   :  { %v1074_v37 = vpop.xlane.xlu1 %1073 }
 0x93f   :  { %v1075_v38 = vmul.f32 0.03125, %v1074_v37 }
 0x941   :  { %v1076_v39 = vsub.f32 %v1069_v33, %v1075_v38 }
 0x943   :  { %v1077_v40 = vmul.f32 %v1076_v39, %v1076_v39 }
 0x945   :  { %v1078_v41 = vsel %vm36_vm1, %v1077_v40, 0.0 }
 0x946   :  { %1079 = vadd.xlane.f32.xlu1 %v1078_v41 }
 0x957   :  { %2282 = vrot.lane.b32.xlu1 %v2281_v42, %s2318_s23 }
 0x95b   :  { %2287 = vrot.lane.b32.xlu1 %v2286_v43, %s2318_s23 }
 0x9d3   :  { %v1080_v35 = vpop.xlane.xlu1 %1079 }
 0x9d4   :  { %v1081_v47 = vmul.f32 0.03125, %v1080_v35 }
 0x9d6   :  { %v1082_v48 = vadd.f32 1e-05, %v1081_v47 }
 0x9d7   :  { %v2283_v50 = vpop.permute.xlu1 %2282 }
 0x9d8   :  { %2301 = vrsqrt.f32 %v1082_v48  ;;  %v2285_v51 = vunpack.i.h.bf16 %v2283_v50  ;;  %v2284_v52 = vunpack.i.l.bf16 %v2283_v50 }
 0x9da   :  { %v2238_v54 = vpack.c.bf16 %v2285_v51, %v2284_v52 }
 0x9db   :  { %v2288_v55 = vpop.permute.xlu1 %2287 }
 0x9dc   :  { %v2290_v56 = vunpack.i.h.bf16 %v2288_v55  ;;  %v2289_v58 = vunpack.i.l.bf16 %v2288_v55  ;;  %2239 = vmatpush3.bf16.msra.mxu0 %v2238_v54 }
 0x9dd   :  { %2240 = vmatprep.subr.bf16.mxu0 %v2315_v0 }
 0x9de   :  { %v2241_v62 = vpack.c.bf16 %v2290_v56, %v2289_v58 }
 0x9e0   :  { %2242 = vmatpush3.bf16.msra.mxu0 %v2241_v62 }
 0x9e1   :  { %2249 = vmatprep.subr.bf16.mxu0 %v2315_v0 }
 0x9e2   :  { %v2302_v1 = vpop.eup %2301 }
 0x9e3   :  { %v1084_v5 = vmul.f32 %v2302_v1, %v1076_v39  ;;  %2118 = vmatmul.mubr.msk.f32.vlgmr.msra.gmra.mrb[14].mxu0 %vm36_vm1, %v1190_v2 }
 0x9e4   :  { %2251 = vmatpush3.bf16.msra.mxu0 %v2250_v63  ;;  %2147 = vmatprep.mubr.msk.f32.mxu0 %vm2316_vm0, %v2317_v4 }
 0x9e5   :  { %v1089_v8 = vmul.f32 %v1857_v3, %v1084_v5  ;;  %2252 = vmatprep.subr.bf16.mxu0 %v2315_v0 }
 0x9e7   :  { %v1094_v9 = vadd.f32 %v1858_v6, %v1089_v8 }
 0x9e8   :  { %2254 = vmatpush3.bf16.msra.mxu0 %v2253_v12 }
 0x9e9   :  { %2129 = vmatmul.mubr.msk.f32.vlgmr.msra.gmra.mrb[10].mxu1 %vm36_vm1, %v1094_v9  ;;  %1808 = vst.msk [vmem:[%s2786_s7] sm:$0xff] %vm36_vm1, %v1094_v9  ;;  %2255 = vmatprep.subr.bf16.mxu0 %v2315_v0 }
 0x9ea   :  { %2152 = vmatprep.mubr.msk.f32.mxu1 %vm2316_vm0, %v2317_v4 }
 0x9ec   :  { %2257 = vmatpush3.bf16.msra.mxu0 %v2256_v16 }
 0x9ed   :  { %2258 = vmatprep.subr.bf16.mxu0 %v2315_v0 }
 0x9f0   :  { %2260 = vmatpush3.bf16.msra.mxu0 %v2259_v19 }
 0xab6   :  { %v1281_v20 = vpop.f32.mrb[14].mxu0 }
 0xab7   :  { %v2119_v21 = vpop.f32.mrb[15].mxu0  ;;  %v1282_v32 = vadd.f32 %v1877_v29, %v1281_v20  ;;  %v1880_v29 = vld [vmem:[%s2784_s6 + $0x18] ss:$0 sm:$0xff] }
 0xab8   :  { %v1885_v21 = vld [vmem:[%s2784_s6 + $0x1b] ss:$0 sm:$0xff] }
 0xab9   :  { %v1286_v33 = vmul.f32 0.01, %v1282_v32  ;;  %vm1285_vm13 = vcmp.gt.f32.partialorder %v1282_v32, 0.0 }
 0xabb   :  { %v1287_v36 = vsel %vm1285_vm13, %v1282_v32, %v1286_v33 }
 0xabc   :  { %v1395_v23 = vpop.f32.mrb[10].mxu1  ;;  %v1288_v37 = vsel %vm36_vm1, %v1287_v36, 0.0 }
 0xabd   :  { %v1396_v24 = vadd.f32 %v1881_v22, %v1395_v23  ;;  %v2130_v26 = vpop.f32.mrb[11].mxu1  ;;  %v1289_v38 = vrot.slane %v1288_v37, 4  ;;  %v1879_v22 = vld [vmem:[%s2784_s6 + $0x17] ss:$0 sm:$0xff] }
 0xabf   :  { %vm1399_vm12 = vcmp.gt.f32.partialorder %v1396_v24, 0.0  ;;  %v1400_v27 = vmul.f32 0.01, %v1396_v24  ;;  %v1290_v39 = vadd.f32 %v1289_v38, %v1288_v37 }
 0xac1   :  { %v1401_v28 = vsel %vm1399_vm12, %v1396_v24, %v1400_v27  ;;  %v1291_v40 = vrot.slane %v1290_v39, 2  ;;  %v1886_v24 = vld [vmem:[%s2784_s6 + $0x1c] ss:$0 sm:$0xff] }
 0xac2   :  { %2148 = vmatmul.mubr.msk.f32.vlgmr.msra.gmra.mrb[16].mxu0 %vm687_vm6, %v1401_v28 }
 0xac3   :  { %v1292_v41 = vadd.f32 %v1291_v40, %v1290_v39 }
 0xac5   :  { %v1293_v42 = vrot.slane %v1292_v41, 1 }
 0xac7   :  { %v1294_v43 = vadd.f32 %v1293_v42, %v1292_v41 }
 0xac9   :  { %v1295_v44 = vmul.f32 0.125, %v1294_v43 }
 0xacb   :  { %v1296_v45 = vsub.f32 %v1287_v36, %v1295_v44  ;;  %v1095_v36 = vld [vmem:[%s2787_s1] sm:$0xff] }
 0xacd   :  { %v1297_v30 = vmul.f32 %v1296_v45, %v1296_v45 }
 0xacf   :  { %v1298_v48 = vsel %vm36_vm1, %v1297_v30, 0.0 }
 0xad0   :  { %v1299_v51 = vrot.slane %v1298_v48, 4 }
 0xad2   :  { %v1300_v54 = vadd.f32 %v1299_v51, %v1298_v48 }
 0xad4   :  { %v1301_v58 = vrot.slane %v1300_v54, 2 }
 0xad6   :  { %v1302_v61 = vadd.f32 %v1301_v58, %v1300_v54 }
 0xad8   :  { %v1303_v1 = vrot.slane %v1302_v61, 1 }
 0xada   :  { %v1304_v6 = vadd.f32 %v1303_v1, %v1302_v61 }
 0xadc   :  { %v1305_v10 = vmul.f32 0.125, %v1304_v6 }
 0xade   :  { %v1306_v13 = vadd.f32 1e-05, %v1305_v10 }
 0xae0   :  { %2303 = vrsqrt.f32 %v1306_v13 }
 0xaea   :  { %v2304_v18 = vpop.eup %2303 }
 0xaeb   :  { %v1308_v20 = vmul.f32 %v2304_v18, %v1296_v45 }
 0xaed   :  { %v1314_v27 = vmul.f32 %v1879_v22, %v1308_v20 }
 0xaef   :  { %v1320_v32 = vadd.f32 %v1880_v29, %v1314_v27 }
 0xb95   :  { %v1476_v31 = vpop.f32.mrb[16].mxu0 }
 0xb96   :  { %v1477_v34 = vadd.f32 %v1883_v46, %v1476_v31  ;;  %v2149_v35 = vpop.f32.mrb[17].mxu0 }
 0xb98   :  { %vm1480_vm14 = vcmp.gt.f32.partialorder %v1477_v34, 0.0  ;;  %v1481_v47 = vmul.f32 0.01, %v1477_v34 }
 0xb9a   :  { %v1482_v49 = vsel %vm1480_vm14, %v1477_v34, %v1481_v47 }
 0xb9b   :  { %v1483_v50 = vsel %vm687_vm6, %v1482_v49, 0.0 }
 0xb9c   :  { %v1484_v52 = vrot.slane %v1483_v50, 4 }
 0xb9e   :  { %v1485_v53 = vadd.f32 %v1484_v52, %v1483_v50 }
 0xba0   :  { %v1486_v55 = vrot.slane %v1485_v53, 2 }
 0xba2   :  { %v1487_v56 = vadd.f32 %v1486_v55, %v1485_v53 }
 0xba4   :  { %v1488_v59 = vrot.slane %v1487_v56, 1 }
 0xba6   :  { %v1489_v60 = vadd.f32 %v1488_v59, %v1487_v56  ;;  %v1891_v56 = vld [vmem:[%s2784_s6 + $0xa] ss:$0 sm:$0xff] }
 0xba8   :  { %v1490_v62 = vmul.f32 0.125, %v1489_v60 }
 0xbaa   :  { %v1491_v63 = vsub.f32 %v1482_v49, %v1490_v62 }
 0xbac   :  { %v1492_v2 = vmul.f32 %v1491_v63, %v1491_v63 }
 0xbae   :  { %v1493_v3 = vsel %vm687_vm6, %v1492_v2, 0.0 }
 0xbaf   :  { %v1494_v5 = vrot.slane %v1493_v3, 4 }
 0xbb1   :  { %v1495_v8 = vadd.f32 %v1494_v5, %v1493_v3 }
 0xbb3   :  { %v1496_v9 = vrot.slane %v1495_v8, 2 }
 0xbb5   :  { %v1497_v11 = vadd.f32 %v1496_v9, %v1495_v8 }
 0xbb7   :  { %v1498_v12 = vrot.slane %v1497_v11, 1 }
 0xbb9   :  { %v1499_v14 = vadd.f32 %v1498_v12, %v1497_v11 }
 0xbbb   :  { %v1500_v16 = vmul.f32 0.125, %v1499_v14  ;;  %v1893_v14 = vld [vmem:[%s2784_s6 + $0xb] ss:$0 sm:$0xff] }
 0xbbd   :  { %v1501_v17 = vadd.f32 1e-05, %v1500_v16 }
 0xbbf   :  { %2305 = vrsqrt.f32 %v1501_v17  ;;  %v1894_v17 = vld [vmem:[%s2784_s6 + $0xc] ss:$0 sm:$0xff] }
 0xbc9   :  { %v2306_v19 = vpop.eup %2305 }
 0xbca   :  { %v1503_v23 = vmul.f32 %v2306_v19, %v1491_v63 }
 0xbcc   :  { %v1509_v26 = vmul.f32 %v1885_v21, %v1503_v23 }
 0xbce   :  { %v1515_v28 = vadd.f32 %v1886_v24, %v1509_v26 }
 0xbd0   :  { %2151 = vmatpush3.xpose.msk.msra.mxu1 %vm36_vm1, %v1515_v28 }
 0xbd1   :  { %2155 = vmatprep.subr.mxu1 %v2317_v4 }
 0xbd3   :  { %2153 = vmatmul.mubr.msk.f32.vlgmr.msra.gmra.mrb[12].mxu1 %vm36_vm1, %v1320_v32 }
 0xbd4   :  { %2157 = vmatprep.mubr.msk.f32.mxu1 %vm2316_vm0, %v2317_v4 }
 0xca6   :  { %v1588_v33 = vpop.f32.mrb[12].mxu1 }
 0xca7   :  { %v1592_v37 = vmul.f32 0.17677669, %v1588_v33  ;;  %v2154_v38 = vpop.f32.mrb[13].mxu1 }
 0xca9   :  { %v1593_v39 = vmul.f32 %v1592_v37, %v1095_v36 }
 0xcab   :  { %v1594_v40 = vsel %vm875_vm9, %v1593_v39, -inf }
 0xcac   :  { %1595 = vmax.xlane.f32.xlu1 %v1594_v40 }
 0xd39   :  { %v1596_v41 = vpop.xlane.xlu1 %1595 }
 0xd3a   :  { %v1597_v42 = vsub.f32 %v1593_v39, %v1596_v41 }
 0xd3c   :  { %v1598_v43 = vmul.f32 1.442695, %v1597_v42 }
 0xd3e   :  { %2307 = vpow2.f32 %v1598_v43 }
 0xd48   :  { %v2308_v44 = vpop.eup %2307 }
 0xd49   :  { %v1600_v45 = vsel %vm875_vm9, %v2308_v44, 0.0 }
 0xd4a   :  { %1601 = vadd.xlane.f32.xlu0 %v1600_v45 }
 0xd60   :  { %1605 = vrot.lane.b32.xlu0 %v1515_v28, %s2318_s23 }
 0xdd7   :  { %v1602_v46 = vpop.xlane.xlu0 %1601 }
 0xdd8   :  { %2309 = vrcp.f32 %v1602_v46 }
 0xddb   :  { %v1606_v30 = vpop.permute.xlu0 %1605 }
 0xddc   :  { %2156 = vmatpush3.msra.mxu1 %v1606_v30 }
 0xddd   :  { %2261 = vmatprep.subr.bf16.mxu1 %v2315_v0 }
 0xde2   :  { %v2310_v31 = vpop.eup %2309 }
 0xde3   :  { %v1604_v34 = vmul.f32 %v2310_v31, %v2308_v44 }
 0xde5   :  { %2158 = vmatmul.mubr.msk.f32.vlgmr.msra.gmra.mrb[14].mxu1 %vm875_vm9, %v1604_v34 }
 0xde6   :  { %2263 = vmatpush3.bf16.msra.mxu1 %v2613_v57  ;;  %2168 = vmatprep.mubr.msk.f32.mxu1 %vm2316_vm0, %v2317_v4 }
 0xde7   :  { %2264 = vmatprep.subr.bf16.mxu1 %v2315_v0 }
 0xdea   :  { %2266 = vmatpush3.bf16.msra.mxu1 %v2623_v15 }
 0xeb8   :  { %v1677_v35 = vpop.f32.mrb[14].mxu1 }
 0xeb9   :  { %v1678_v47 = vadd.f32 %v1677_v35, %v2488_v7  ;;  %v2159_v48 = vpop.f32.mrb[15].mxu1  ;;  %v1890_v7 = vld [vmem:[%s2784_s6 + $0x9] ss:$0 sm:$0xff] }
 0xebb   :  { %v1683_v49 = vsel %vm36_vm1, %v1678_v47, 0.0 }
 0xebc   :  { %1684 = vadd.xlane.f32.xlu0 %v1683_v49 }
 0xf49   :  { %v1685_v50 = vpop.xlane.xlu0 %1684 }
 0xf4a   :  { %v1686_v51 = vmul.f32 0.03125, %v1685_v50 }
 0xf4c   :  { %v1687_v52 = vsub.f32 %v1678_v47, %v1686_v51 }
 0xf4e   :  { %v1688_v53 = vmul.f32 %v1687_v52, %v1687_v52 }
 0xf50   :  { %v1689_v57 = vsel %vm36_vm1, %v1688_v53, 0.0 }
 0xf51   :  { %1690 = vadd.xlane.f32.xlu1 %v1689_v57 }
 0xfde   :  { %v1691_v54 = vpop.xlane.xlu1 %1690 }
 0xfdf   :  { %v1692_v4 = vmul.f32 0.03125, %v1691_v54 }
 0xfe1   :  { %v1693_v55 = vadd.f32 1e-05, %v1692_v4 }
 0xfe3   :  { %2311 = vrsqrt.f32 %v1693_v55 }
 0xfed   :  { %v2312_v0 = vpop.eup %2311 }
 0xfee   :  { %v1695_v15 = vmul.f32 %v2312_v0, %v1687_v52 }
 0xff0   :  { %v1700_v58 = vmul.f32 %v1890_v7, %v1695_v15 }
 0xff2   :  { %v1705_v59 = vadd.f32 %v1891_v56, %v1700_v58 }
 0xff4   :  { %2169 = vmatmul.mubr.msk.f32.vlgmr.msra.gmra.mrb[16].mxu1 %vm36_vm1, %v1705_v59 }
0x10c7   :  { %v1775_v60 = vpop.f32.mrb[16].mxu1 }
0x10c8   :  { %v1776_v61 = vadd.f32 %v2639_v25, %v1775_v60  ;;  %v2170_v62 = vpop.f32.mrb[17].mxu1 }
0x10ca   :  { %vm1779_vm15 = vcmp.gt.f32.partialorder %v1776_v61, 0.0  ;;  %v1780_v63 = vmul.f32 0.01, %v1776_v61 }
0x10cc   :  { %v1781_v1 = vsel %vm1779_vm15, %v1776_v61, %v1780_v63 }
0x10cd   :  { %v1782_v2 = vadd.f32 %v1781_v1, %v1705_v59 }
0x10cf   :  { %v1785_v3 = vsel %vm36_vm1, %v1782_v2, 0.0 }
0x10d0   :  { %1786 = vadd.xlane.f32.xlu1 %v1785_v3 }
0x115d   :  { %v1787_v5 = vpop.xlane.xlu1 %1786 }
0x115e   :  { %v1788_v6 = vmul.f32 0.03125, %v1787_v5 }
0x1160   :  { %v1789_v8 = vsub.f32 %v1782_v2, %v1788_v6 }
0x1162   :  { %v1790_v9 = vmul.f32 %v1789_v8, %v1789_v8 }
0x1164   :  { %v1791_v10 = vsel %vm36_vm1, %v1790_v9, 0.0 }
0x1165   :  { %1792 = vadd.xlane.f32.xlu1 %v1791_v10 }
0x11f2   :  { %v1793_v11 = vpop.xlane.xlu1 %1792 }
0x11f3   :  { %v1794_v12 = vmul.f32 0.03125, %v1793_v11 }
0x11f5   :  { %v1795_v13 = vadd.f32 1e-05, %v1794_v12 }
0x11f7   :  { %2313 = vrsqrt.f32 %v1795_v13 }
0x1201   :  { %v2314_v25 = vpop.eup %2313 }
0x1202   :  { %v1797_v16 = vmul.f32 %v2314_v25, %v1789_v8 }
0x1204   :  { %v1802_v18 = vmul.f32 %v1893_v14, %v1797_v16 }
0x1206   :  { %v1807_v19 = vadd.f32 %v1894_v17, %v1802_v18 }
0x1208   :  { %1809 = vst.msk [vmem:[%s2786_s7 + $0x8] sm:$0xff] %vm36_vm1, %v1807_v19 }

</bundles_post_ra>
